<compile_context>
chip_gen: v7x
topology: tpu7x:2x2x1
jax: 0.10.0
libtpu: 0.0.40
codegen_flags: <defaults>
</compile_context>

<pallas_src>
import functools

import numpy as np
import jax
import jax.numpy as jnp
from jax.experimental import pallas as pl
from jax.experimental.pallas import tpu as pltpu


def _sep_conv2d_kernel(x_ref, wdw_ref, wpw_ref, b_ref, o_ref, xpad_ref, *,
                       KH, KW, SH, SW, PH, PW, H, W, OH, OW, Cin, Cout):
    """Fused depthwise(KHxKW) + pointwise(1x1) + bias for one batch element.

    x_ref   : (1, Cin, H, W)    VMEM  un-padded NCHW input block
    wdw_ref : (Cin, KH*KW)      SMEM  depthwise weights, pre-scaled by std_dw
    wpw_ref : (Cout, Cin)       SMEM  pointwise  weights, pre-scaled by std_pw
    b_ref   : (Cout,)           SMEM  channel_conv bias
    o_ref   : (1, Cout, OH, OW) VMEM  output block (interior of the final image)
    xpad_ref: (Cin, Hp, Wp)     VMEM  scratch: zero-padded copy of the input
    """
    # ---- spatial_conv zero padding folded into the kernel (no wrapper jnp.pad pass) ----
    if PH or PW:
        xpad_ref[...] = jnp.zeros_like(xpad_ref)
        xpad_ref[:, PH:PH + H, PW:PW + W] = x_ref[0]
    else:
        xpad_ref[...] = x_ref[0]

    # ---- depthwise conv: per-channel REGISTER accumulation of KH*KW scalar-weighted windows
    # (windows are sliced straight off the scratch ref; vld slots absorb the re-reads) ----
    y = []
    for c in range(Cin):
        acc = None
        for i in range(KH):
            for j in range(KW):
                if SH == 1 and SW == 1:
                    win = xpad_ref[c, i:i + OH, j:j + OW]
                else:
                    # TODO(synk): strided window reads are functional but untuned.
                    win = xpad_ref[c, pl.ds(i, OH, SH), pl.ds(j, OW, SW)]
                term = win * wdw_ref[c, i * KW + j]        # scalar (SMEM) x tile FMA on VPU
                acc = term if acc is None else acc + term
        y.append(acc)

    # ---- pointwise 1x1 conv + fused bias: Cout*Cin scalar-weighted VPU FMAs ----
    # TODO(synk): switch to an MXU dot_general (contract Cin on sublanes of a (Cin, OH*OW)
    #             slab) when Cin is large; at Cin=4 the matmul is pure push/pop latency.
    for co in range(Cout):
        z = y[0] * wpw_ref[co, 0]
        for c in range(1, Cin):
            z = z + y[c] * wpw_ref[co, c]
        o_ref[0, co] = (z + b_ref[co]).astype(o_ref.dtype)


def lreq_separable_conv2d(x_nchw, w_dw, w_pw, bias, *, stride=(1, 1), padding=(0, 0),
                          gain=np.sqrt(2.0)):
    """Forward of SeparableConv2d (transpose=False, dilation=1, bias=True path).

    x_nchw : (N, Cin, H, W)     float32
    w_dw   : (Cin, 1, KH, KW)   float32  spatial_conv.weight  (depthwise, groups=Cin)
    w_pw   : (Cout, Cin, 1, 1)  float32  channel_conv.weight  (1x1 pointwise)
    bias   : (Cout,)            float32  channel_conv.bias
    returns: (N, Cout, OH + 2, OW + 2)   (the 1x1 channel_conv uses padding=1, stride=1)
    """
    N, Cin, H, W = x_nchw.shape
    Cin_w, one, KH, KW = w_dw.shape
    Cout = w_pw.shape[0]
    assert (Cin_w, one, w_pw.shape[1]) == (Cin, 1, Cin)
    SH, SW = stride
    PH, PW = padding
    Hp, Wp = H + 2 * PH, W + 2 * PW
    OH = (Hp - KH) // SH + 1
    OW = (Wp - KW) // SW + 1

    # ---- equalized-LR scaling (implicit_lreq=False): applied to the weights at call time ----
    std_dw = 1.0 / np.sqrt(KH * KW)                     # spatial_conv: gain=1, lrmul=1
    std_pw = gain / np.sqrt(Cin)                        # channel_conv: 1x1, gain, lrmul=1
    wdw = (w_dw[:, 0, :, :] * jnp.float32(std_dw)).reshape(Cin, KH * KW)   # (Cin, KH*KW)
    wpw = w_pw[:, :, 0, 0] * jnp.float32(std_pw)                           # (Cout, Cin)
    b = (bias * jnp.float32(1.0)).astype(jnp.float32)                      # bias * lrmul (=1)

    kernel = functools.partial(
        _sep_conv2d_kernel, KH=KH, KW=KW, SH=SH, SW=SW, PH=PH, PW=PW,
        H=H, W=W, OH=OH, OW=OW, Cin=Cin, Cout=Cout)

    interior = pl.pallas_call(
        kernel,
        out_shape=jax.ShapeDtypeStruct((N, Cout, OH, OW), jnp.float32),
        grid_spec=pltpu.PrefetchScalarGridSpec(
            num_scalar_prefetch=0,
            grid=(N,),
            in_specs=[
                pl.BlockSpec((1, Cin, H, W), lambda n: (n, 0, 0, 0)),      # NCHW, no relayout
                pl.BlockSpec(memory_space=pltpu.MemorySpace.SMEM),         # depthwise weights
                pl.BlockSpec(memory_space=pltpu.MemorySpace.SMEM),         # pointwise weights
                pl.BlockSpec(memory_space=pltpu.MemorySpace.SMEM),         # bias
            ],
            out_specs=pl.BlockSpec((1, Cout, OH, OW), lambda n: (n, 0, 0, 0)),
            scratch_shapes=[pltpu.VMEM((Cin, Hp, Wp), jnp.float32)],
        ),
        compiler_params=pltpu.CompilerParams(dimension_semantics=("parallel",)),
    )(x_nchw, wdw, wpw, b)

    # channel_conv is a 1x1 conv with padding=1, stride=1: its zero-padded ring of y gives a
    # final border equal to the bias.  Build it as a bias canvas + one interior update (the
    # interior already has the bias added in-kernel).
    canvas = jnp.broadcast_to(b.reshape(1, Cout, 1, 1), (N, Cout, OH + 2, OW + 2))
    return jax.lax.dynamic_update_slice(canvas, interior, (0, 0, 1, 1))


def _reference_separable_conv2d(x_nchw, w_dw, w_pw, bias, *, stride, padding, gain):
    """Pure-JAX reference: depthwise conv then 1x1 conv (padding=1), exactly as the module."""
    N, Cin, H, W = x_nchw.shape
    KH, KW = w_dw.shape[2], w_dw.shape[3]
    std_dw = 1.0 / np.sqrt(KH * KW)
    y = jax.lax.conv_general_dilated(
        x_nchw, w_dw * jnp.float32(std_dw),
        window_strides=stride,
        padding=[(padding[0], padding[0]), (padding[1], padding[1])],
        dimension_numbers=("NCHW", "OIHW", "NCHW"),
        feature_group_count=Cin)
    std_pw = gain / np.sqrt(Cin)
    out = jax.lax.conv_general_dilated(
        y, w_pw * jnp.float32(std_pw),
        window_strides=(1, 1),
        padding=[(1, 1), (1, 1)],
        dimension_numbers=("NCHW", "OIHW", "NCHW"))
    return out + bias[None, :, None, None]


if __name__ == "__main__":
    # SeparableConv2d(in_channels=4, out_channels=8, kernel_size=3, stride=1, padding=1)
    N, Cin, H, W = 2, 4, 16, 16
    Cout, KH, KW = 8, 3, 3
    stride, padding = (1, 1), (1, 1)
    gain = np.sqrt(2.0)

    key = jax.random.PRNGKey(0)
    kx, kdw, kpw, kb = jax.random.split(key, 4)
    x = jax.random.normal(kx, (N, Cin, H, W), dtype=jnp.float32)
    # reset_parameters with implicit_lreq=False: weights ~ N(0, 1/lrmul) = N(0, 1).
    w_dw = jax.random.normal(kdw, (Cin, 1, KH, KW), dtype=jnp.float32)
    w_pw = jax.random.normal(kpw, (Cout, Cin, 1, 1), dtype=jnp.float32)
    # the module zeroes the bias at init; use a non-zero one so the bias path is exercised.
    bias = jax.random.normal(kb, (Cout,), dtype=jnp.float32) * 0.1

    out = lreq_separable_conv2d(x, w_dw, w_pw, bias, stride=stride, padding=padding, gain=gain)
    out = jax.block_until_ready(out)

    ref = _reference_separable_conv2d(x, w_dw, w_pw, bias, stride=stride, padding=padding,
                                      gain=gain)
    ref = jax.block_until_ready(ref)

    OH = (H + 2 * padding[0] - KH) // stride[0] + 1
    OW = (W + 2 * padding[1] - KW) // stride[1] + 1
    assert out.shape == (N, Cout, OH + 2, OW + 2), out.shape
    np.testing.assert_allclose(np.asarray(out), np.asarray(ref), rtol=1e-4, atol=1e-5)
    print("KERNEL_OK")
</pallas_src>

<mosaic_0001>
module attributes {stable_mosaic.version = 11 : i64} {
  func.func @_sep_conv2d_kernel(%arg0: i32, %arg1: memref<1x4x16x16xf32, #tpu.memory_space<vmem>>, %arg2: memref<4x9xf32, #tpu.memory_space<smem>>, %arg3: memref<8x4xf32, #tpu.memory_space<smem>>, %arg4: memref<8xf32, #tpu.memory_space<smem>>, %arg5: memref<1x8x16x16xf32, #tpu.memory_space<vmem>>, %arg6: memref<4x18x18xf32, #tpu.memory_space<vmem>>) attributes {dimension_semantics = [#tpu.dimension_semantics<parallel>], iteration_bounds = array<i64: 2>, scalar_prefetch = 0 : i64, scratch_operands = 1 : i64, tpu.core_type = #tpu.core_type<tc>, window_params = [{transform_indices = @transform_0, window_bounds = array<i64: 1, 4, 16, 16>}, {transform_indices = @transform_1, window_bounds = array<i64: 4, 9>}, {transform_indices = @transform_2, window_bounds = array<i64: 8, 4>}, {transform_indices = @transform_3, window_bounds = array<i64: 8>}, {transform_indices = @transform_4, window_bounds = array<i64: 1, 8, 16, 16>}]} {
    %cst = arith.constant 0.000000e+00 : f32
    %0 = vector.broadcast %cst : f32 to vector<4x18x18xf32>
    %c0 = arith.constant 0 : index
    %c0_0 = arith.constant 0 : index
    %c0_1 = arith.constant 0 : index
    %1 = vector.load %arg6[%c0, %c0_0, %c0_1] : memref<4x18x18xf32, #tpu.memory_space<vmem>>, vector<4x18x18xf32>
    tpu.vector_store %arg6[%c0, %c0_0, %c0_1], %0 {strides = array<i32>} : memref<4x18x18xf32, #tpu.memory_space<vmem>>, vector<4x18x18xf32>,
    %c0_2 = arith.constant 0 : index
    %c0_3 = arith.constant 0 : index
    %c0_4 = arith.constant 0 : index
    %c0_5 = arith.constant 0 : index
    %2 = vector.load %arg1[%c0_2, %c0_3, %c0_4, %c0_5] : memref<1x4x16x16xf32, #tpu.memory_space<vmem>>, vector<1x4x16x16xf32>
    %3 = vector.shape_cast %2 : vector<1x4x16x16xf32> to vector<4x16x16xf32>
    %c0_6 = arith.constant 0 : index
    %c1 = arith.constant 1 : index
    %c1_7 = arith.constant 1 : index
    %4 = vector.load %arg6[%c0_6, %c1, %c1_7] : memref<4x18x18xf32, #tpu.memory_space<vmem>>, vector<4x16x16xf32>
    tpu.vector_store %arg6[%c0_6, %c1, %c1_7], %3 {strides = array<i32>} : memref<4x18x18xf32, #tpu.memory_space<vmem>>, vector<4x16x16xf32>,
    %c0_8 = arith.constant 0 : index
    %c0_9 = arith.constant 0 : index
    %c0_10 = arith.constant 0 : index
    %5 = vector.load %arg6[%c0_8, %c0_9, %c0_10] : memref<4x18x18xf32, #tpu.memory_space<vmem>>, vector<1x16x16xf32>
    %6 = vector.shape_cast %5 : vector<1x16x16xf32> to vector<16x16xf32>
    %c0_11 = arith.constant 0 : index
    %c0_12 = arith.constant 0 : index
    %7 = memref.load %arg2[%c0_11, %c0_12] : memref<4x9xf32, #tpu.memory_space<smem>>
    %8 = vector.broadcast %7 : f32 to vector<16x16xf32>
    %9 = arith.mulf %6, %8 : vector<16x16xf32>
    %c0_13 = arith.constant 0 : index
    %c0_14 = arith.constant 0 : index
    %c1_15 = arith.constant 1 : index
    %10 = vector.load %arg6[%c0_13, %c0_14, %c1_15] : memref<4x18x18xf32, #tpu.memory_space<vmem>>, vector<1x16x16xf32>
    %11 = vector.shape_cast %10 : vector<1x16x16xf32> to vector<16x16xf32>
    %c0_16 = arith.constant 0 : index
    %c1_17 = arith.constant 1 : index
    %12 = memref.load %arg2[%c0_16, %c1_17] : memref<4x9xf32, #tpu.memory_space<smem>>
    %13 = vector.broadcast %12 : f32 to vector<16x16xf32>
    %14 = arith.mulf %11, %13 : vector<16x16xf32>
    %15 = arith.addf %9, %14 : vector<16x16xf32>
    %c0_18 = arith.constant 0 : index
    %c0_19 = arith.constant 0 : index
    %c2 = arith.constant 2 : index
    %16 = vector.load %arg6[%c0_18, %c0_19, %c2] : memref<4x18x18xf32, #tpu.memory_space<vmem>>, vector<1x16x16xf32>
    %17 = vector.shape_cast %16 : vector<1x16x16xf32> to vector<16x16xf32>
    %c0_20 = arith.constant 0 : index
    %c2_21 = arith.constant 2 : index
    %18 = memref.load %arg2[%c0_20, %c2_21] : memref<4x9xf32, #tpu.memory_space<smem>>
    %19 = vector.broadcast %18 : f32 to vector<16x16xf32>
    %20 = arith.mulf %17, %19 : vector<16x16xf32>
    %21 = arith.addf %15, %20 : vector<16x16xf32>
    %c0_22 = arith.constant 0 : index
    %c1_23 = arith.constant 1 : index
    %c0_24 = arith.constant 0 : index
    %22 = vector.load %arg6[%c0_22, %c1_23, %c0_24] : memref<4x18x18xf32, #tpu.memory_space<vmem>>, vector<1x16x16xf32>
    %23 = vector.shape_cast %22 : vector<1x16x16xf32> to vector<16x16xf32>
    %c0_25 = arith.constant 0 : index
    %c3 = arith.constant 3 : index
    %24 = memref.load %arg2[%c0_25, %c3] : memref<4x9xf32, #tpu.memory_space<smem>>
    %25 = vector.broadcast %24 : f32 to vector<16x16xf32>
    %26 = arith.mulf %23, %25 : vector<16x16xf32>
    %27 = arith.addf %21, %26 : vector<16x16xf32>
    %c0_26 = arith.constant 0 : index
    %c1_27 = arith.constant 1 : index
    %c1_28 = arith.constant 1 : index
    %28 = vector.load %arg6[%c0_26, %c1_27, %c1_28] : memref<4x18x18xf32, #tpu.memory_space<vmem>>, vector<1x16x16xf32>
    %29 = vector.shape_cast %28 : vector<1x16x16xf32> to vector<16x16xf32>
    %c0_29 = arith.constant 0 : index
    %c4 = arith.constant 4 : index
    %30 = memref.load %arg2[%c0_29, %c4] : memref<4x9xf32, #tpu.memory_space<smem>>
    %31 = vector.broadcast %30 : f32 to vector<16x16xf32>
    %32 = arith.mulf %29, %31 : vector<16x16xf32>
    %33 = arith.addf %27, %32 : vector<16x16xf32>
    %c0_30 = arith.constant 0 : index
    %c1_31 = arith.constant 1 : index
    %c2_32 = arith.constant 2 : index
    %34 = vector.load %arg6[%c0_30, %c1_31, %c2_32] : memref<4x18x18xf32, #tpu.memory_space<vmem>>, vector<1x16x16xf32>
    %35 = vector.shape_cast %34 : vector<1x16x16xf32> to vector<16x16xf32>
    %c0_33 = arith.constant 0 : index
    %c5 = arith.constant 5 : index
    %36 = memref.load %arg2[%c0_33, %c5] : memref<4x9xf32, #tpu.memory_space<smem>>
    %37 = vector.broadcast %36 : f32 to vector<16x16xf32>
    %38 = arith.mulf %35, %37 : vector<16x16xf32>
    %39 = arith.addf %33, %38 : vector<16x16xf32>
    %c0_34 = arith.constant 0 : index
    %c2_35 = arith.constant 2 : index
    %c0_36 = arith.constant 0 : index
    %40 = vector.load %arg6[%c0_34, %c2_35, %c0_36] : memref<4x18x18xf32, #tpu.memory_space<vmem>>, vector<1x16x16xf32>
    %41 = vector.shape_cast %40 : vector<1x16x16xf32> to vector<16x16xf32>
    %c0_37 = arith.constant 0 : index
    %c6 = arith.constant 6 : index
    %42 = memref.load %arg2[%c0_37, %c6] : memref<4x9xf32, #tpu.memory_space<smem>>
    %43 = vector.broadcast %42 : f32 to vector<16x16xf32>
    %44 = arith.mulf %41, %43 : vector<16x16xf32>
    %45 = arith.addf %39, %44 : vector<16x16xf32>
    %c0_38 = arith.constant 0 : index
    %c2_39 = arith.constant 2 : index
    %c1_40 = arith.constant 1 : index
    %46 = vector.load %arg6[%c0_38, %c2_39, %c1_40] : memref<4x18x18xf32, #tpu.memory_space<vmem>>, vector<1x16x16xf32>
    %47 = vector.shape_cast %46 : vector<1x16x16xf32> to vector<16x16xf32>
    %c0_41 = arith.constant 0 : index
    %c7 = arith.constant 7 : index
    %48 = memref.load %arg2[%c0_41, %c7] : memref<4x9xf32, #tpu.memory_space<smem>>
    %49 = vector.broadcast %48 : f32 to vector<16x16xf32>
    %50 = arith.mulf %47, %49 : vector<16x16xf32>
    %51 = arith.addf %45, %50 : vector<16x16xf32>
    %c0_42 = arith.constant 0 : index
    %c2_43 = arith.constant 2 : index
    %c2_44 = arith.constant 2 : index
    %52 = vector.load %arg6[%c0_42, %c2_43, %c2_44] : memref<4x18x18xf32, #tpu.memory_space<vmem>>, vector<1x16x16xf32>
    %53 = vector.shape_cast %52 : vector<1x16x16xf32> to vector<16x16xf32>
    %c0_45 = arith.constant 0 : index
    %c8 = arith.constant 8 : index
    %54 = memref.load %arg2[%c0_45, %c8] : memref<4x9xf32, #tpu.memory_space<smem>>
    %55 = vector.broadcast %54 : f32 to vector<16x16xf32>
    %56 = arith.mulf %53, %55 : vector<16x16xf32>
    %57 = arith.addf %51, %56 : vector<16x16xf32>
    %c1_46 = arith.constant 1 : index
    %c0_47 = arith.constant 0 : index
    %c0_48 = arith.constant 0 : index
    %58 = vector.load %arg6[%c1_46, %c0_47, %c0_48] : memref<4x18x18xf32, #tpu.memory_space<vmem>>, vector<1x16x16xf32>
    %59 = vector.shape_cast %58 : vector<1x16x16xf32> to vector<16x16xf32>
    %c1_49 = arith.constant 1 : index
    %c0_50 = arith.constant 0 : index
    %60 = memref.load %arg2[%c1_49, %c0_50] : memref<4x9xf32, #tpu.memory_space<smem>>
    %61 = vector.broadcast %60 : f32 to vector<16x16xf32>
    %62 = arith.mulf %59, %61 : vector<16x16xf32>
    %c1_51 = arith.constant 1 : index
    %c0_52 = arith.constant 0 : index
    %c1_53 = arith.constant 1 : index
    %63 = vector.load %arg6[%c1_51, %c0_52, %c1_53] : memref<4x18x18xf32, #tpu.memory_space<vmem>>, vector<1x16x16xf32>
    %64 = vector.shape_cast %63 : vector<1x16x16xf32> to vector<16x16xf32>
    %c1_54 = arith.constant 1 : index
    %c1_55 = arith.constant 1 : index
    %65 = memref.load %arg2[%c1_54, %c1_55] : memref<4x9xf32, #tpu.memory_space<smem>>
    %66 = vector.broadcast %65 : f32 to vector<16x16xf32>
    %67 = arith.mulf %64, %66 : vector<16x16xf32>
    %68 = arith.addf %62, %67 : vector<16x16xf32>
    %c1_56 = arith.constant 1 : index
    %c0_57 = arith.constant 0 : index
    %c2_58 = arith.constant 2 : index
    %69 = vector.load %arg6[%c1_56, %c0_57, %c2_58] : memref<4x18x18xf32, #tpu.memory_space<vmem>>, vector<1x16x16xf32>
    %70 = vector.shape_cast %69 : vector<1x16x16xf32> to vector<16x16xf32>
    %c1_59 = arith.constant 1 : index
    %c2_60 = arith.constant 2 : index
    %71 = memref.load %arg2[%c1_59, %c2_60] : memref<4x9xf32, #tpu.memory_space<smem>>
    %72 = vector.broadcast %71 : f32 to vector<16x16xf32>
    %73 = arith.mulf %70, %72 : vector<16x16xf32>
    %74 = arith.addf %68, %73 : vector<16x16xf32>
    %c1_61 = arith.constant 1 : index
    %c1_62 = arith.constant 1 : index
    %c0_63 = arith.constant 0 : index
    %75 = vector.load %arg6[%c1_61, %c1_62, %c0_63] : memref<4x18x18xf32, #tpu.memory_space<vmem>>, vector<1x16x16xf32>
    %76 = vector.shape_cast %75 : vector<1x16x16xf32> to vector<16x16xf32>
    %c1_64 = arith.constant 1 : index
    %c3_65 = arith.constant 3 : index
    %77 = memref.load %arg2[%c1_64, %c3_65] : memref<4x9xf32, #tpu.memory_space<smem>>
    %78 = vector.broadcast %77 : f32 to vector<16x16xf32>
    %79 = arith.mulf %76, %78 : vector<16x16xf32>
    %80 = arith.addf %74, %79 : vector<16x16xf32>
    %c1_66 = arith.constant 1 : index
    %c1_67 = arith.constant 1 : index
    %c1_68 = arith.constant 1 : index
    %81 = vector.load %arg6[%c1_66, %c1_67, %c1_68] : memref<4x18x18xf32, #tpu.memory_space<vmem>>, vector<1x16x16xf32>
    %82 = vector.shape_cast %81 : vector<1x16x16xf32> to vector<16x16xf32>
    %c1_69 = arith.constant 1 : index
    %c4_70 = arith.constant 4 : index
    %83 = memref.load %arg2[%c1_69, %c4_70] : memref<4x9xf32, #tpu.memory_space<smem>>
    %84 = vector.broadcast %83 : f32 to vector<16x16xf32>
    %85 = arith.mulf %82, %84 : vector<16x16xf32>
    %86 = arith.addf %80, %85 : vector<16x16xf32>
    %c1_71 = arith.constant 1 : index
    %c1_72 = arith.constant 1 : index
    %c2_73 = arith.constant 2 : index
    %87 = vector.load %arg6[%c1_71, %c1_72, %c2_73] : memref<4x18x18xf32, #tpu.memory_space<vmem>>, vector<1x16x16xf32>
    %88 = vector.shape_cast %87 : vector<1x16x16xf32> to vector<16x16xf32>
    %c1_74 = arith.constant 1 : index
    %c5_75 = arith.constant 5 : index
    %89 = memref.load %arg2[%c1_74, %c5_75] : memref<4x9xf32, #tpu.memory_space<smem>>
    %90 = vector.broadcast %89 : f32 to vector<16x16xf32>
    %91 = arith.mulf %88, %90 : vector<16x16xf32>
    %92 = arith.addf %86, %91 : vector<16x16xf32>
    %c1_76 = arith.constant 1 : index
    %c2_77 = arith.constant 2 : index
    %c0_78 = arith.constant 0 : index
    %93 = vector.load %arg6[%c1_76, %c2_77, %c0_78] : memref<4x18x18xf32, #tpu.memory_space<vmem>>, vector<1x16x16xf32>
    %94 = vector.shape_cast %93 : vector<1x16x16xf32> to vector<16x16xf32>
    %c1_79 = arith.constant 1 : index
    %c6_80 = arith.constant 6 : index
    %95 = memref.load %arg2[%c1_79, %c6_80] : memref<4x9xf32, #tpu.memory_space<smem>>
    %96 = vector.broadcast %95 : f32 to vector<16x16xf32>
    %97 = arith.mulf %94, %96 : vector<16x16xf32>
    %98 = arith.addf %92, %97 : vector<16x16xf32>
    %c1_81 = arith.constant 1 : index
    %c2_82 = arith.constant 2 : index
    %c1_83 = arith.constant 1 : index
    %99 = vector.load %arg6[%c1_81, %c2_82, %c1_83] : memref<4x18x18xf32, #tpu.memory_space<vmem>>, vector<1x16x16xf32>
    %100 = vector.shape_cast %99 : vector<1x16x16xf32> to vector<16x16xf32>
    %c1_84 = arith.constant 1 : index
    %c7_85 = arith.constant 7 : index
    %101 = memref.load %arg2[%c1_84, %c7_85] : memref<4x9xf32, #tpu.memory_space<smem>>
    %102 = vector.broadcast %101 : f32 to vector<16x16xf32>
    %103 = arith.mulf %100, %102 : vector<16x16xf32>
    %104 = arith.addf %98, %103 : vector<16x16xf32>
    %c1_86 = arith.constant 1 : index
    %c2_87 = arith.constant 2 : index
    %c2_88 = arith.constant 2 : index
    %105 = vector.load %arg6[%c1_86, %c2_87, %c2_88] : memref<4x18x18xf32, #tpu.memory_space<vmem>>, vector<1x16x16xf32>
    %106 = vector.shape_cast %105 : vector<1x16x16xf32> to vector<16x16xf32>
    %c1_89 = arith.constant 1 : index
    %c8_90 = arith.constant 8 : index
    %107 = memref.load %arg2[%c1_89, %c8_90] : memref<4x9xf32, #tpu.memory_space<smem>>
    %108 = vector.broadcast %107 : f32 to vector<16x16xf32>
    %109 = arith.mulf %106, %108 : vector<16x16xf32>
    %110 = arith.addf %104, %109 : vector<16x16xf32>
    %c2_91 = arith.constant 2 : index
    %c0_92 = arith.constant 0 : index
    %c0_93 = arith.constant 0 : index
    %111 = vector.load %arg6[%c2_91, %c0_92, %c0_93] : memref<4x18x18xf32, #tpu.memory_space<vmem>>, vector<1x16x16xf32>
    %112 = vector.shape_cast %111 : vector<1x16x16xf32> to vector<16x16xf32>
    %c2_94 = arith.constant 2 : index
    %c0_95 = arith.constant 0 : index
    %113 = memref.load %arg2[%c2_94, %c0_95] : memref<4x9xf32, #tpu.memory_space<smem>>
    %114 = vector.broadcast %113 : f32 to vector<16x16xf32>
    %115 = arith.mulf %112, %114 : vector<16x16xf32>
    %c2_96 = arith.constant 2 : index
    %c0_97 = arith.constant 0 : index
    %c1_98 = arith.constant 1 : index
    %116 = vector.load %arg6[%c2_96, %c0_97, %c1_98] : memref<4x18x18xf32, #tpu.memory_space<vmem>>, vector<1x16x16xf32>
    %117 = vector.shape_cast %116 : vector<1x16x16xf32> to vector<16x16xf32>
    %c2_99 = arith.constant 2 : index
    %c1_100 = arith.constant 1 : index
    %118 = memref.load %arg2[%c2_99, %c1_100] : memref<4x9xf32, #tpu.memory_space<smem>>
    %119 = vector.broadcast %118 : f32 to vector<16x16xf32>
    %120 = arith.mulf %117, %119 : vector<16x16xf32>
    %121 = arith.addf %115, %120 : vector<16x16xf32>
    %c2_101 = arith.constant 2 : index
    %c0_102 = arith.constant 0 : index
    %c2_103 = arith.constant 2 : index
    %122 = vector.load %arg6[%c2_101, %c0_102, %c2_103] : memref<4x18x18xf32, #tpu.memory_space<vmem>>, vector<1x16x16xf32>
    %123 = vector.shape_cast %122 : vector<1x16x16xf32> to vector<16x16xf32>
    %c2_104 = arith.constant 2 : index
    %c2_105 = arith.constant 2 : index
    %124 = memref.load %arg2[%c2_104, %c2_105] : memref<4x9xf32, #tpu.memory_space<smem>>
    %125 = vector.broadcast %124 : f32 to vector<16x16xf32>
    %126 = arith.mulf %123, %125 : vector<16x16xf32>
    %127 = arith.addf %121, %126 : vector<16x16xf32>
    %c2_106 = arith.constant 2 : index
    %c1_107 = arith.constant 1 : index
    %c0_108 = arith.constant 0 : index
    %128 = vector.load %arg6[%c2_106, %c1_107, %c0_108] : memref<4x18x18xf32, #tpu.memory_space<vmem>>, vector<1x16x16xf32>
    %129 = vector.shape_cast %128 : vector<1x16x16xf32> to vector<16x16xf32>
    %c2_109 = arith.constant 2 : index
    %c3_110 = arith.constant 3 : index
    %130 = memref.load %arg2[%c2_109, %c3_110] : memref<4x9xf32, #tpu.memory_space<smem>>
    %131 = vector.broadcast %130 : f32 to vector<16x16xf32>
    %132 = arith.mulf %129, %131 : vector<16x16xf32>
    %133 = arith.addf %127, %132 : vector<16x16xf32>
    %c2_111 = arith.constant 2 : index
    %c1_112 = arith.constant 1 : index
    %c1_113 = arith.constant 1 : index
    %134 = vector.load %arg6[%c2_111, %c1_112, %c1_113] : memref<4x18x18xf32, #tpu.memory_space<vmem>>, vector<1x16x16xf32>
    %135 = vector.shape_cast %134 : vector<1x16x16xf32> to vector<16x16xf32>
    %c2_114 = arith.constant 2 : index
    %c4_115 = arith.constant 4 : index
    %136 = memref.load %arg2[%c2_114, %c4_115] : memref<4x9xf32, #tpu.memory_space<smem>>
    %137 = vector.broadcast %136 : f32 to vector<16x16xf32>
    %138 = arith.mulf %135, %137 : vector<16x16xf32>
    %139 = arith.addf %133, %138 : vector<16x16xf32>
    %c2_116 = arith.constant 2 : index
    %c1_117 = arith.constant 1 : index
    %c2_118 = arith.constant 2 : index
    %140 = vector.load %arg6[%c2_116, %c1_117, %c2_118] : memref<4x18x18xf32, #tpu.memory_space<vmem>>, vector<1x16x16xf32>
    %141 = vector.shape_cast %140 : vector<1x16x16xf32> to vector<16x16xf32>
    %c2_119 = arith.constant 2 : index
    %c5_120 = arith.constant 5 : index
    %142 = memref.load %arg2[%c2_119, %c5_120] : memref<4x9xf32, #tpu.memory_space<smem>>
    %143 = vector.broadcast %142 : f32 to vector<16x16xf32>
    %144 = arith.mulf %141, %143 : vector<16x16xf32>
    %145 = arith.addf %139, %144 : vector<16x16xf32>
    %c2_121 = arith.constant 2 : index
    %c2_122 = arith.constant 2 : index
    %c0_123 = arith.constant 0 : index
    %146 = vector.load %arg6[%c2_121, %c2_122, %c0_123] : memref<4x18x18xf32, #tpu.memory_space<vmem>>, vector<1x16x16xf32>
    %147 = vector.shape_cast %146 : vector<1x16x16xf32> to vector<16x16xf32>
    %c2_124 = arith.constant 2 : index
    %c6_125 = arith.constant 6 : index
    %148 = memref.load %arg2[%c2_124, %c6_125] : memref<4x9xf32, #tpu.memory_space<smem>>
    %149 = vector.broadcast %148 : f32 to vector<16x16xf32>
    %150 = arith.mulf %147, %149 : vector<16x16xf32>
    %151 = arith.addf %145, %150 : vector<16x16xf32>
    %c2_126 = arith.constant 2 : index
    %c2_127 = arith.constant 2 : index
    %c1_128 = arith.constant 1 : index
    %152 = vector.load %arg6[%c2_126, %c2_127, %c1_128] : memref<4x18x18xf32, #tpu.memory_space<vmem>>, vector<1x16x16xf32>
    %153 = vector.shape_cast %152 : vector<1x16x16xf32> to vector<16x16xf32>
    %c2_129 = arith.constant 2 : index
    %c7_130 = arith.constant 7 : index
    %154 = memref.load %arg2[%c2_129, %c7_130] : memref<4x9xf32, #tpu.memory_space<smem>>
    %155 = vector.broadcast %154 : f32 to vector<16x16xf32>
    %156 = arith.mulf %153, %155 : vector<16x16xf32>
    %157 = arith.addf %151, %156 : vector<16x16xf32>
    %c2_131 = arith.constant 2 : index
    %c2_132 = arith.constant 2 : index
    %c2_133 = arith.constant 2 : index
    %158 = vector.load %arg6[%c2_131, %c2_132, %c2_133] : memref<4x18x18xf32, #tpu.memory_space<vmem>>, vector<1x16x16xf32>
    %159 = vector.shape_cast %158 : vector<1x16x16xf32> to vector<16x16xf32>
    %c2_134 = arith.constant 2 : index
    %c8_135 = arith.constant 8 : index
    %160 = memref.load %arg2[%c2_134, %c8_135] : memref<4x9xf32, #tpu.memory_space<smem>>
    %161 = vector.broadcast %160 : f32 to vector<16x16xf32>
    %162 = arith.mulf %159, %161 : vector<16x16xf32>
    %163 = arith.addf %157, %162 : vector<16x16xf32>
    %c3_136 = arith.constant 3 : index
    %c0_137 = arith.constant 0 : index
    %c0_138 = arith.constant 0 : index
    %164 = vector.load %arg6[%c3_136, %c0_137, %c0_138] : memref<4x18x18xf32, #tpu.memory_space<vmem>>, vector<1x16x16xf32>
    %165 = vector.shape_cast %164 : vector<1x16x16xf32> to vector<16x16xf32>
    %c3_139 = arith.constant 3 : index
    %c0_140 = arith.constant 0 : index
    %166 = memref.load %arg2[%c3_139, %c0_140] : memref<4x9xf32, #tpu.memory_space<smem>>
    %167 = vector.broadcast %166 : f32 to vector<16x16xf32>
    %168 = arith.mulf %165, %167 : vector<16x16xf32>
    %c3_141 = arith.constant 3 : index
    %c0_142 = arith.constant 0 : index
    %c1_143 = arith.constant 1 : index
    %169 = vector.load %arg6[%c3_141, %c0_142, %c1_143] : memref<4x18x18xf32, #tpu.memory_space<vmem>>, vector<1x16x16xf32>
    %170 = vector.shape_cast %169 : vector<1x16x16xf32> to vector<16x16xf32>
    %c3_144 = arith.constant 3 : index
    %c1_145 = arith.constant 1 : index
    %171 = memref.load %arg2[%c3_144, %c1_145] : memref<4x9xf32, #tpu.memory_space<smem>>
    %172 = vector.broadcast %171 : f32 to vector<16x16xf32>
    %173 = arith.mulf %170, %172 : vector<16x16xf32>
    %174 = arith.addf %168, %173 : vector<16x16xf32>
    %c3_146 = arith.constant 3 : index
    %c0_147 = arith.constant 0 : index
    %c2_148 = arith.constant 2 : index
    %175 = vector.load %arg6[%c3_146, %c0_147, %c2_148] : memref<4x18x18xf32, #tpu.memory_space<vmem>>, vector<1x16x16xf32>
    %176 = vector.shape_cast %175 : vector<1x16x16xf32> to vector<16x16xf32>
    %c3_149 = arith.constant 3 : index
    %c2_150 = arith.constant 2 : index
    %177 = memref.load %arg2[%c3_149, %c2_150] : memref<4x9xf32, #tpu.memory_space<smem>>
    %178 = vector.broadcast %177 : f32 to vector<16x16xf32>
    %179 = arith.mulf %176, %178 : vector<16x16xf32>
    %180 = arith.addf %174, %179 : vector<16x16xf32>
    %c3_151 = arith.constant 3 : index
    %c1_152 = arith.constant 1 : index
    %c0_153 = arith.constant 0 : index
    %181 = vector.load %arg6[%c3_151, %c1_152, %c0_153] : memref<4x18x18xf32, #tpu.memory_space<vmem>>, vector<1x16x16xf32>
    %182 = vector.shape_cast %181 : vector<1x16x16xf32> to vector<16x16xf32>
    %c3_154 = arith.constant 3 : index
    %c3_155 = arith.constant 3 : index
    %183 = memref.load %arg2[%c3_154, %c3_155] : memref<4x9xf32, #tpu.memory_space<smem>>
    %184 = vector.broadcast %183 : f32 to vector<16x16xf32>
    %185 = arith.mulf %182, %184 : vector<16x16xf32>
    %186 = arith.addf %180, %185 : vector<16x16xf32>
    %c3_156 = arith.constant 3 : index
    %c1_157 = arith.constant 1 : index
    %c1_158 = arith.constant 1 : index
    %187 = vector.load %arg6[%c3_156, %c1_157, %c1_158] : memref<4x18x18xf32, #tpu.memory_space<vmem>>, vector<1x16x16xf32>
    %188 = vector.shape_cast %187 : vector<1x16x16xf32> to vector<16x16xf32>
    %c3_159 = arith.constant 3 : index
    %c4_160 = arith.constant 4 : index
    %189 = memref.load %arg2[%c3_159, %c4_160] : memref<4x9xf32, #tpu.memory_space<smem>>
    %190 = vector.broadcast %189 : f32 to vector<16x16xf32>
    %191 = arith.mulf %188, %190 : vector<16x16xf32>
    %192 = arith.addf %186, %191 : vector<16x16xf32>
    %c3_161 = arith.constant 3 : index
    %c1_162 = arith.constant 1 : index
    %c2_163 = arith.constant 2 : index
    %193 = vector.load %arg6[%c3_161, %c1_162, %c2_163] : memref<4x18x18xf32, #tpu.memory_space<vmem>>, vector<1x16x16xf32>
    %194 = vector.shape_cast %193 : vector<1x16x16xf32> to vector<16x16xf32>
    %c3_164 = arith.constant 3 : index
    %c5_165 = arith.constant 5 : index
    %195 = memref.load %arg2[%c3_164, %c5_165] : memref<4x9xf32, #tpu.memory_space<smem>>
    %196 = vector.broadcast %195 : f32 to vector<16x16xf32>
    %197 = arith.mulf %194, %196 : vector<16x16xf32>
    %198 = arith.addf %192, %197 : vector<16x16xf32>
    %c3_166 = arith.constant 3 : index
    %c2_167 = arith.constant 2 : index
    %c0_168 = arith.constant 0 : index
    %199 = vector.load %arg6[%c3_166, %c2_167, %c0_168] : memref<4x18x18xf32, #tpu.memory_space<vmem>>, vector<1x16x16xf32>
    %200 = vector.shape_cast %199 : vector<1x16x16xf32> to vector<16x16xf32>
    %c3_169 = arith.constant 3 : index
    %c6_170 = arith.constant 6 : index
    %201 = memref.load %arg2[%c3_169, %c6_170] : memref<4x9xf32, #tpu.memory_space<smem>>
    %202 = vector.broadcast %201 : f32 to vector<16x16xf32>
    %203 = arith.mulf %200, %202 : vector<16x16xf32>
    %204 = arith.addf %198, %203 : vector<16x16xf32>
    %c3_171 = arith.constant 3 : index
    %c2_172 = arith.constant 2 : index
    %c1_173 = arith.constant 1 : index
    %205 = vector.load %arg6[%c3_171, %c2_172, %c1_173] : memref<4x18x18xf32, #tpu.memory_space<vmem>>, vector<1x16x16xf32>
    %206 = vector.shape_cast %205 : vector<1x16x16xf32> to vector<16x16xf32>
    %c3_174 = arith.constant 3 : index
    %c7_175 = arith.constant 7 : index
    %207 = memref.load %arg2[%c3_174, %c7_175] : memref<4x9xf32, #tpu.memory_space<smem>>
    %208 = vector.broadcast %207 : f32 to vector<16x16xf32>
    %209 = arith.mulf %206, %208 : vector<16x16xf32>
    %210 = arith.addf %204, %209 : vector<16x16xf32>
    %c3_176 = arith.constant 3 : index
    %c2_177 = arith.constant 2 : index
    %c2_178 = arith.constant 2 : index
    %211 = vector.load %arg6[%c3_176, %c2_177, %c2_178] : memref<4x18x18xf32, #tpu.memory_space<vmem>>, vector<1x16x16xf32>
    %212 = vector.shape_cast %211 : vector<1x16x16xf32> to vector<16x16xf32>
    %c3_179 = arith.constant 3 : index
    %c8_180 = arith.constant 8 : index
    %213 = memref.load %arg2[%c3_179, %c8_180] : memref<4x9xf32, #tpu.memory_space<smem>>
    %214 = vector.broadcast %213 : f32 to vector<16x16xf32>
    %215 = arith.mulf %212, %214 : vector<16x16xf32>
    %216 = arith.addf %210, %215 : vector<16x16xf32>
    %c0_181 = arith.constant 0 : index
    %c0_182 = arith.constant 0 : index
    %217 = memref.load %arg3[%c0_181, %c0_182] : memref<8x4xf32, #tpu.memory_space<smem>>
    %218 = vector.broadcast %217 : f32 to vector<16x16xf32>
    %219 = arith.mulf %57, %218 : vector<16x16xf32>
    %c0_183 = arith.constant 0 : index
    %c1_184 = arith.constant 1 : index
    %220 = memref.load %arg3[%c0_183, %c1_184] : memref<8x4xf32, #tpu.memory_space<smem>>
    %221 = vector.broadcast %220 : f32 to vector<16x16xf32>
    %222 = arith.mulf %110, %221 : vector<16x16xf32>
    %223 = arith.addf %219, %222 : vector<16x16xf32>
    %c0_185 = arith.constant 0 : index
    %c2_186 = arith.constant 2 : index
    %224 = memref.load %arg3[%c0_185, %c2_186] : memref<8x4xf32, #tpu.memory_space<smem>>
    %225 = vector.broadcast %224 : f32 to vector<16x16xf32>
    %226 = arith.mulf %163, %225 : vector<16x16xf32>
    %227 = arith.addf %223, %226 : vector<16x16xf32>
    %c0_187 = arith.constant 0 : index
    %c3_188 = arith.constant 3 : index
    %228 = memref.load %arg3[%c0_187, %c3_188] : memref<8x4xf32, #tpu.memory_space<smem>>
    %229 = vector.broadcast %228 : f32 to vector<16x16xf32>
    %230 = arith.mulf %216, %229 : vector<16x16xf32>
    %231 = arith.addf %227, %230 : vector<16x16xf32>
    %c0_189 = arith.constant 0 : index
    %232 = memref.load %arg4[%c0_189] : memref<8xf32, #tpu.memory_space<smem>>
    %233 = vector.broadcast %232 : f32 to vector<16x16xf32>
    %234 = arith.addf %231, %233 : vector<16x16xf32>
    %c0_190 = arith.constant 0 : index
    %c0_191 = arith.constant 0 : index
    %c0_192 = arith.constant 0 : index
    %c0_193 = arith.constant 0 : index
    %235 = vector.load %arg5[%c0_190, %c0_191, %c0_192, %c0_193] : memref<1x8x16x16xf32, #tpu.memory_space<vmem>>, vector<1x1x16x16xf32>
    %236 = vector.shape_cast %235 : vector<1x1x16x16xf32> to vector<16x16xf32>
    %237 = vector.shape_cast %234 : vector<16x16xf32> to vector<1x1x16x16xf32>
    tpu.vector_store %arg5[%c0_190, %c0_191, %c0_192, %c0_193], %237 {strides = array<i32>} : memref<1x8x16x16xf32, #tpu.memory_space<vmem>>, vector<1x1x16x16xf32>,
    %c1_194 = arith.constant 1 : index
    %c0_195 = arith.constant 0 : index
    %238 = memref.load %arg3[%c1_194, %c0_195] : memref<8x4xf32, #tpu.memory_space<smem>>
    %239 = vector.broadcast %238 : f32 to vector<16x16xf32>
    %240 = arith.mulf %57, %239 : vector<16x16xf32>
    %c1_196 = arith.constant 1 : index
    %c1_197 = arith.constant 1 : index
    %241 = memref.load %arg3[%c1_196, %c1_197] : memref<8x4xf32, #tpu.memory_space<smem>>
    %242 = vector.broadcast %241 : f32 to vector<16x16xf32>
    %243 = arith.mulf %110, %242 : vector<16x16xf32>
    %244 = arith.addf %240, %243 : vector<16x16xf32>
    %c1_198 = arith.constant 1 : index
    %c2_199 = arith.constant 2 : index
    %245 = memref.load %arg3[%c1_198, %c2_199] : memref<8x4xf32, #tpu.memory_space<smem>>
    %246 = vector.broadcast %245 : f32 to vector<16x16xf32>
    %247 = arith.mulf %163, %246 : vector<16x16xf32>
    %248 = arith.addf %244, %247 : vector<16x16xf32>
    %c1_200 = arith.constant 1 : index
    %c3_201 = arith.constant 3 : index
    %249 = memref.load %arg3[%c1_200, %c3_201] : memref<8x4xf32, #tpu.memory_space<smem>>
    %250 = vector.broadcast %249 : f32 to vector<16x16xf32>
    %251 = arith.mulf %216, %250 : vector<16x16xf32>
    %252 = arith.addf %248, %251 : vector<16x16xf32>
    %c1_202 = arith.constant 1 : index
    %253 = memref.load %arg4[%c1_202] : memref<8xf32, #tpu.memory_space<smem>>
    %254 = vector.broadcast %253 : f32 to vector<16x16xf32>
    %255 = arith.addf %252, %254 : vector<16x16xf32>
    %c0_203 = arith.constant 0 : index
    %c1_204 = arith.constant 1 : index
    %c0_205 = arith.constant 0 : index
    %c0_206 = arith.constant 0 : index
    %256 = vector.load %arg5[%c0_203, %c1_204, %c0_205, %c0_206] : memref<1x8x16x16xf32, #tpu.memory_space<vmem>>, vector<1x1x16x16xf32>
    %257 = vector.shape_cast %256 : vector<1x1x16x16xf32> to vector<16x16xf32>
    %258 = vector.shape_cast %255 : vector<16x16xf32> to vector<1x1x16x16xf32>
    tpu.vector_store %arg5[%c0_203, %c1_204, %c0_205, %c0_206], %258 {strides = array<i32>} : memref<1x8x16x16xf32, #tpu.memory_space<vmem>>, vector<1x1x16x16xf32>,
    %c2_207 = arith.constant 2 : index
    %c0_208 = arith.constant 0 : index
    %259 = memref.load %arg3[%c2_207, %c0_208] : memref<8x4xf32, #tpu.memory_space<smem>>
    %260 = vector.broadcast %259 : f32 to vector<16x16xf32>
    %261 = arith.mulf %57, %260 : vector<16x16xf32>
    %c2_209 = arith.constant 2 : index
    %c1_210 = arith.constant 1 : index
    %262 = memref.load %arg3[%c2_209, %c1_210] : memref<8x4xf32, #tpu.memory_space<smem>>
    %263 = vector.broadcast %262 : f32 to vector<16x16xf32>
    %264 = arith.mulf %110, %263 : vector<16x16xf32>
    %265 = arith.addf %261, %264 : vector<16x16xf32>
    %c2_211 = arith.constant 2 : index
    %c2_212 = arith.constant 2 : index
    %266 = memref.load %arg3[%c2_211, %c2_212] : memref<8x4xf32, #tpu.memory_space<smem>>
    %267 = vector.broadcast %266 : f32 to vector<16x16xf32>
    %268 = arith.mulf %163, %267 : vector<16x16xf32>
    %269 = arith.addf %265, %268 : vector<16x16xf32>
    %c2_213 = arith.constant 2 : index
    %c3_214 = arith.constant 3 : index
    %270 = memref.load %arg3[%c2_213, %c3_214] : memref<8x4xf32, #tpu.memory_space<smem>>
    %271 = vector.broadcast %270 : f32 to vector<16x16xf32>
    %272 = arith.mulf %216, %271 : vector<16x16xf32>
    %273 = arith.addf %269, %272 : vector<16x16xf32>
    %c2_215 = arith.constant 2 : index
    %274 = memref.load %arg4[%c2_215] : memref<8xf32, #tpu.memory_space<smem>>
    %275 = vector.broadcast %274 : f32 to vector<16x16xf32>
    %276 = arith.addf %273, %275 : vector<16x16xf32>
    %c0_216 = arith.constant 0 : index
    %c2_217 = arith.constant 2 : index
    %c0_218 = arith.constant 0 : index
    %c0_219 = arith.constant 0 : index
    %277 = vector.load %arg5[%c0_216, %c2_217, %c0_218, %c0_219] : memref<1x8x16x16xf32, #tpu.memory_space<vmem>>, vector<1x1x16x16xf32>
    %278 = vector.shape_cast %277 : vector<1x1x16x16xf32> to vector<16x16xf32>
    %279 = vector.shape_cast %276 : vector<16x16xf32> to vector<1x1x16x16xf32>
    tpu.vector_store %arg5[%c0_216, %c2_217, %c0_218, %c0_219], %279 {strides = array<i32>} : memref<1x8x16x16xf32, #tpu.memory_space<vmem>>, vector<1x1x16x16xf32>,
    %c3_220 = arith.constant 3 : index
    %c0_221 = arith.constant 0 : index
    %280 = memref.load %arg3[%c3_220, %c0_221] : memref<8x4xf32, #tpu.memory_space<smem>>
    %281 = vector.broadcast %280 : f32 to vector<16x16xf32>
    %282 = arith.mulf %57, %281 : vector<16x16xf32>
    %c3_222 = arith.constant 3 : index
    %c1_223 = arith.constant 1 : index
    %283 = memref.load %arg3[%c3_222, %c1_223] : memref<8x4xf32, #tpu.memory_space<smem>>
    %284 = vector.broadcast %283 : f32 to vector<16x16xf32>
    %285 = arith.mulf %110, %284 : vector<16x16xf32>
    %286 = arith.addf %282, %285 : vector<16x16xf32>
    %c3_224 = arith.constant 3 : index
    %c2_225 = arith.constant 2 : index
    %287 = memref.load %arg3[%c3_224, %c2_225] : memref<8x4xf32, #tpu.memory_space<smem>>
    %288 = vector.broadcast %287 : f32 to vector<16x16xf32>
    %289 = arith.mulf %163, %288 : vector<16x16xf32>
    %290 = arith.addf %286, %289 : vector<16x16xf32>
    %c3_226 = arith.constant 3 : index
    %c3_227 = arith.constant 3 : index
    %291 = memref.load %arg3[%c3_226, %c3_227] : memref<8x4xf32, #tpu.memory_space<smem>>
    %292 = vector.broadcast %291 : f32 to vector<16x16xf32>
    %293 = arith.mulf %216, %292 : vector<16x16xf32>
    %294 = arith.addf %290, %293 : vector<16x16xf32>
    %c3_228 = arith.constant 3 : index
    %295 = memref.load %arg4[%c3_228] : memref<8xf32, #tpu.memory_space<smem>>
    %296 = vector.broadcast %295 : f32 to vector<16x16xf32>
    %297 = arith.addf %294, %296 : vector<16x16xf32>
    %c0_229 = arith.constant 0 : index
    %c3_230 = arith.constant 3 : index
    %c0_231 = arith.constant 0 : index
    %c0_232 = arith.constant 0 : index
    %298 = vector.load %arg5[%c0_229, %c3_230, %c0_231, %c0_232] : memref<1x8x16x16xf32, #tpu.memory_space<vmem>>, vector<1x1x16x16xf32>
    %299 = vector.shape_cast %298 : vector<1x1x16x16xf32> to vector<16x16xf32>
    %300 = vector.shape_cast %297 : vector<16x16xf32> to vector<1x1x16x16xf32>
    tpu.vector_store %arg5[%c0_229, %c3_230, %c0_231, %c0_232], %300 {strides = array<i32>} : memref<1x8x16x16xf32, #tpu.memory_space<vmem>>, vector<1x1x16x16xf32>,
    %c4_233 = arith.constant 4 : index
    %c0_234 = arith.constant 0 : index
    %301 = memref.load %arg3[%c4_233, %c0_234] : memref<8x4xf32, #tpu.memory_space<smem>>
    %302 = vector.broadcast %301 : f32 to vector<16x16xf32>
    %303 = arith.mulf %57, %302 : vector<16x16xf32>
    %c4_235 = arith.constant 4 : index
    %c1_236 = arith.constant 1 : index
    %304 = memref.load %arg3[%c4_235, %c1_236] : memref<8x4xf32, #tpu.memory_space<smem>>
    %305 = vector.broadcast %304 : f32 to vector<16x16xf32>
    %306 = arith.mulf %110, %305 : vector<16x16xf32>
    %307 = arith.addf %303, %306 : vector<16x16xf32>
    %c4_237 = arith.constant 4 : index
    %c2_238 = arith.constant 2 : index
    %308 = memref.load %arg3[%c4_237, %c2_238] : memref<8x4xf32, #tpu.memory_space<smem>>
    %309 = vector.broadcast %308 : f32 to vector<16x16xf32>
    %310 = arith.mulf %163, %309 : vector<16x16xf32>
    %311 = arith.addf %307, %310 : vector<16x16xf32>
    %c4_239 = arith.constant 4 : index
    %c3_240 = arith.constant 3 : index
    %312 = memref.load %arg3[%c4_239, %c3_240] : memref<8x4xf32, #tpu.memory_space<smem>>
    %313 = vector.broadcast %312 : f32 to vector<16x16xf32>
    %314 = arith.mulf %216, %313 : vector<16x16xf32>
    %315 = arith.addf %311, %314 : vector<16x16xf32>
    %c4_241 = arith.constant 4 : index
    %316 = memref.load %arg4[%c4_241] : memref<8xf32, #tpu.memory_space<smem>>
    %317 = vector.broadcast %316 : f32 to vector<16x16xf32>
    %318 = arith.addf %315, %317 : vector<16x16xf32>
    %c0_242 = arith.constant 0 : index
    %c4_243 = arith.constant 4 : index
    %c0_244 = arith.constant 0 : index
    %c0_245 = arith.constant 0 : index
    %319 = vector.load %arg5[%c0_242, %c4_243, %c0_244, %c0_245] : memref<1x8x16x16xf32, #tpu.memory_space<vmem>>, vector<1x1x16x16xf32>
    %320 = vector.shape_cast %319 : vector<1x1x16x16xf32> to vector<16x16xf32>
    %321 = vector.shape_cast %318 : vector<16x16xf32> to vector<1x1x16x16xf32>
    tpu.vector_store %arg5[%c0_242, %c4_243, %c0_244, %c0_245], %321 {strides = array<i32>} : memref<1x8x16x16xf32, #tpu.memory_space<vmem>>, vector<1x1x16x16xf32>,
    %c5_246 = arith.constant 5 : index
    %c0_247 = arith.constant 0 : index
    %322 = memref.load %arg3[%c5_246, %c0_247] : memref<8x4xf32, #tpu.memory_space<smem>>
    %323 = vector.broadcast %322 : f32 to vector<16x16xf32>
    %324 = arith.mulf %57, %323 : vector<16x16xf32>
    %c5_248 = arith.constant 5 : index
    %c1_249 = arith.constant 1 : index
    %325 = memref.load %arg3[%c5_248, %c1_249] : memref<8x4xf32, #tpu.memory_space<smem>>
    %326 = vector.broadcast %325 : f32 to vector<16x16xf32>
    %327 = arith.mulf %110, %326 : vector<16x16xf32>
    %328 = arith.addf %324, %327 : vector<16x16xf32>
    %c5_250 = arith.constant 5 : index
    %c2_251 = arith.constant 2 : index
    %329 = memref.load %arg3[%c5_250, %c2_251] : memref<8x4xf32, #tpu.memory_space<smem>>
    %330 = vector.broadcast %329 : f32 to vector<16x16xf32>
    %331 = arith.mulf %163, %330 : vector<16x16xf32>
    %332 = arith.addf %328, %331 : vector<16x16xf32>
    %c5_252 = arith.constant 5 : index
    %c3_253 = arith.constant 3 : index
    %333 = memref.load %arg3[%c5_252, %c3_253] : memref<8x4xf32, #tpu.memory_space<smem>>
    %334 = vector.broadcast %333 : f32 to vector<16x16xf32>
    %335 = arith.mulf %216, %334 : vector<16x16xf32>
    %336 = arith.addf %332, %335 : vector<16x16xf32>
    %c5_254 = arith.constant 5 : index
    %337 = memref.load %arg4[%c5_254] : memref<8xf32, #tpu.memory_space<smem>>
    %338 = vector.broadcast %337 : f32 to vector<16x16xf32>
    %339 = arith.addf %336, %338 : vector<16x16xf32>
    %c0_255 = arith.constant 0 : index
    %c5_256 = arith.constant 5 : index
    %c0_257 = arith.constant 0 : index
    %c0_258 = arith.constant 0 : index
    %340 = vector.load %arg5[%c0_255, %c5_256, %c0_257, %c0_258] : memref<1x8x16x16xf32, #tpu.memory_space<vmem>>, vector<1x1x16x16xf32>
    %341 = vector.shape_cast %340 : vector<1x1x16x16xf32> to vector<16x16xf32>
    %342 = vector.shape_cast %339 : vector<16x16xf32> to vector<1x1x16x16xf32>
    tpu.vector_store %arg5[%c0_255, %c5_256, %c0_257, %c0_258], %342 {strides = array<i32>} : memref<1x8x16x16xf32, #tpu.memory_space<vmem>>, vector<1x1x16x16xf32>,
    %c6_259 = arith.constant 6 : index
    %c0_260 = arith.constant 0 : index
    %343 = memref.load %arg3[%c6_259, %c0_260] : memref<8x4xf32, #tpu.memory_space<smem>>
    %344 = vector.broadcast %343 : f32 to vector<16x16xf32>
    %345 = arith.mulf %57, %344 : vector<16x16xf32>
    %c6_261 = arith.constant 6 : index
    %c1_262 = arith.constant 1 : index
    %346 = memref.load %arg3[%c6_261, %c1_262] : memref<8x4xf32, #tpu.memory_space<smem>>
    %347 = vector.broadcast %346 : f32 to vector<16x16xf32>
    %348 = arith.mulf %110, %347 : vector<16x16xf32>
    %349 = arith.addf %345, %348 : vector<16x16xf32>
    %c6_263 = arith.constant 6 : index
    %c2_264 = arith.constant 2 : index
    %350 = memref.load %arg3[%c6_263, %c2_264] : memref<8x4xf32, #tpu.memory_space<smem>>
    %351 = vector.broadcast %350 : f32 to vector<16x16xf32>
    %352 = arith.mulf %163, %351 : vector<16x16xf32>
    %353 = arith.addf %349, %352 : vector<16x16xf32>
    %c6_265 = arith.constant 6 : index
    %c3_266 = arith.constant 3 : index
    %354 = memref.load %arg3[%c6_265, %c3_266] : memref<8x4xf32, #tpu.memory_space<smem>>
    %355 = vector.broadcast %354 : f32 to vector<16x16xf32>
    %356 = arith.mulf %216, %355 : vector<16x16xf32>
    %357 = arith.addf %353, %356 : vector<16x16xf32>
    %c6_267 = arith.constant 6 : index
    %358 = memref.load %arg4[%c6_267] : memref<8xf32, #tpu.memory_space<smem>>
    %359 = vector.broadcast %358 : f32 to vector<16x16xf32>
    %360 = arith.addf %357, %359 : vector<16x16xf32>
    %c0_268 = arith.constant 0 : index
    %c6_269 = arith.constant 6 : index
    %c0_270 = arith.constant 0 : index
    %c0_271 = arith.constant 0 : index
    %361 = vector.load %arg5[%c0_268, %c6_269, %c0_270, %c0_271] : memref<1x8x16x16xf32, #tpu.memory_space<vmem>>, vector<1x1x16x16xf32>
    %362 = vector.shape_cast %361 : vector<1x1x16x16xf32> to vector<16x16xf32>
    %363 = vector.shape_cast %360 : vector<16x16xf32> to vector<1x1x16x16xf32>
    tpu.vector_store %arg5[%c0_268, %c6_269, %c0_270, %c0_271], %363 {strides = array<i32>} : memref<1x8x16x16xf32, #tpu.memory_space<vmem>>, vector<1x1x16x16xf32>,
    %c7_272 = arith.constant 7 : index
    %c0_273 = arith.constant 0 : index
    %364 = memref.load %arg3[%c7_272, %c0_273] : memref<8x4xf32, #tpu.memory_space<smem>>
    %365 = vector.broadcast %364 : f32 to vector<16x16xf32>
    %366 = arith.mulf %57, %365 : vector<16x16xf32>
    %c7_274 = arith.constant 7 : index
    %c1_275 = arith.constant 1 : index
    %367 = memref.load %arg3[%c7_274, %c1_275] : memref<8x4xf32, #tpu.memory_space<smem>>
    %368 = vector.broadcast %367 : f32 to vector<16x16xf32>
    %369 = arith.mulf %110, %368 : vector<16x16xf32>
    %370 = arith.addf %366, %369 : vector<16x16xf32>
    %c7_276 = arith.constant 7 : index
    %c2_277 = arith.constant 2 : index
    %371 = memref.load %arg3[%c7_276, %c2_277] : memref<8x4xf32, #tpu.memory_space<smem>>
    %372 = vector.broadcast %371 : f32 to vector<16x16xf32>
    %373 = arith.mulf %163, %372 : vector<16x16xf32>
    %374 = arith.addf %370, %373 : vector<16x16xf32>
    %c7_278 = arith.constant 7 : index
    %c3_279 = arith.constant 3 : index
    %375 = memref.load %arg3[%c7_278, %c3_279] : memref<8x4xf32, #tpu.memory_space<smem>>
    %376 = vector.broadcast %375 : f32 to vector<16x16xf32>
    %377 = arith.mulf %216, %376 : vector<16x16xf32>
    %378 = arith.addf %374, %377 : vector<16x16xf32>
    %c7_280 = arith.constant 7 : index
    %379 = memref.load %arg4[%c7_280] : memref<8xf32, #tpu.memory_space<smem>>
    %380 = vector.broadcast %379 : f32 to vector<16x16xf32>
    %381 = arith.addf %378, %380 : vector<16x16xf32>
    %c0_281 = arith.constant 0 : index
    %c7_282 = arith.constant 7 : index
    %c0_283 = arith.constant 0 : index
    %c0_284 = arith.constant 0 : index
    %382 = vector.load %arg5[%c0_281, %c7_282, %c0_283, %c0_284] : memref<1x8x16x16xf32, #tpu.memory_space<vmem>>, vector<1x1x16x16xf32>
    %383 = vector.shape_cast %382 : vector<1x1x16x16xf32> to vector<16x16xf32>
    %384 = vector.shape_cast %381 : vector<16x16xf32> to vector<1x1x16x16xf32>
    tpu.vector_store %arg5[%c0_281, %c7_282, %c0_283, %c0_284], %384 {strides = array<i32>} : memref<1x8x16x16xf32, #tpu.memory_space<vmem>>, vector<1x1x16x16xf32>,
    return
  }
  func.func @transform_0(%arg0: i32) -> (i32, i32, i32, i32) {
    %c0_i32 = arith.constant 0 : i32
    %c0_i32_0 = arith.constant 0 : i32
    %c0_i32_1 = arith.constant 0 : i32
    %c0_i32_2 = arith.constant 0 : i32
    return %arg0, %c0_i32, %c0_i32_0, %c0_i32_1 : i32, i32, i32, i32
  }
  func.func @transform_1(%arg0: i32) -> (i32, i32) {
    %c0_i32 = arith.constant 0 : i32
    %c0_i32_0 = arith.constant 0 : i32
    %c0_i32_1 = arith.constant 0 : i32
    return %c0_i32, %c0_i32_0 : i32, i32
  }
  func.func @transform_2(%arg0: i32) -> (i32, i32) {
    %c0_i32 = arith.constant 0 : i32
    %c0_i32_0 = arith.constant 0 : i32
    %c0_i32_1 = arith.constant 0 : i32
    return %c0_i32, %c0_i32_0 : i32, i32
  }
  func.func @transform_3(%arg0: i32) -> i32 {
    %c0_i32 = arith.constant 0 : i32
    %c0_i32_0 = arith.constant 0 : i32
    return %c0_i32 : i32
  }
  func.func @transform_4(%arg0: i32) -> (i32, i32, i32, i32) {
    %c0_i32 = arith.constant 0 : i32
    %c0_i32_0 = arith.constant 0 : i32
    %c0_i32_1 = arith.constant 0 : i32
    %c0_i32_2 = arith.constant 0 : i32
    return %arg0, %c0_i32, %c0_i32_0, %c0_i32_1 : i32, i32, i32, i32
  }
}

</mosaic_0001>

<bundles_post_ra>
// kernel: tpu_custom_call.1
= control target key start
LH: loop header
LB: loop body
LE: loop exit
PB: predicated region body
PF: predicated region fallthrough
CT: control target
= control target key end

     0   :  { %s2237_s0 = inlined_call_operand.hbm [shape: f32[2,4,16,16], index: 0, kind: input, shape index: {}]   ;;  %s2238_s1 = inlined_call_operand.vmem [shape: f32[4,9], index: 1, kind: input, shape index: {}]   ;;  %s2239_s2 = inlined_call_operand.vmem [shape: f32[8,4], index: 2, kind: input, shape index: {}]   ;;  %s2240_s3 = inlined_call_operand.vmem [shape: f32[8], index: 3, kind: input, shape index: {}]   ;;  %s2241_s4 = inlined_call_operand.hbm [shape: f32[2,8,16,16], index: 4, kind: output, shape index: {}]  }
   0x1   :  { %2258 = sst [smem:[#allocation26_spill]] %s2237_s0 }
   0x2   :  { %2259 = sst [smem:[#allocation27_spill]] %s2238_s1 }
   0x3   :  { %2260 = sst [smem:[#allocation28_spill]] %s2239_s2 }
   0x4   :  { %2261 = sst [smem:[#allocation29_spill]] %s2240_s3 }
   0x5   :  { %2262 = sst [smem:[#allocation30_spill]] %s2241_s4 }
   0x6   :  { %9 = vsyncpa [#allocation4], 0 }
   0x7   :  { %11 = vsyncpa [#allocation4 + $0x1], 0 }
   0x8   :  { %12 = vsyncpa [#allocation6], 0 }
   0x9   :  { %13 = vsyncpa [#allocation9], 0 }
   0xa   :  { %14 = vsyncpa [#allocation5], 0 }
   0xb   :  { %16 = vsyncpa [#allocation5 + $0x1], 0  ;;  %s1478_s15 = smov 0   ;;  %s1480_s16 = smov 0  }
   0xc   :  { %s1482_s17 = smov 0   ;;  %s1484_s18 = smov 0  }
   0xd LB: > { %2263 = sst [smem:[#allocation16_spill]] %s1426_s15  ;;  %s1499_s19 = sadd.s32 4294967295, %s1438_s18   ;;  %s1438_s18 = sphi %s1484_s18, %s2299_s18   ;;  %s1434_s17 = sphi %s1482_s17, %s2302_s17   ;;  %s1430_s16 = sphi %s1480_s16, %s2301_s16   ;;  %s1426_s15 = sphi %s1478_s15, %s2300_s15  }
   0xe   : > { %2264 = sst [smem:[#allocation17_spill]] %s1430_s16  ;;  %s1095_s20 = sadd.s32 4294967294, %s1438_s18  }
   0xf   : > { %2265 = sst [smem:[#allocation18_spill]] %s1434_s17  ;;  %p42_p0 = scmp.ne.s32.totalorder %s1430_s16, %s1426_s15 }
  0x10   : > { %2266 = sst [smem:[#allocation19_spill]] %s1438_s18  ;;  %p2242_p1 = scmp.eq.s32.totalorder %s1499_s19, 0 }
  0x11   : > { %2267 = sst [smem:[#allocation20_spill]] %s1499_s19  ;;  %p135_p3 = scmp.eq.s32.totalorder %s1095_s20, 1 }
  0x12   : > { %p1508_p4 = por %p2242_p1, %p42_p0  ;;  %p1096_p5 = scmp.ge.s32.totalorder %s1438_s18, 1 }
  0x13   : > { %p1513_p6 = por %p135_p3, %p42_p0  ;;  %p142_p7 = scmp.lt.s32.totalorder %s1438_s18, 3 }
  0x14   : > { %s2268_s21 = scalar_select %p1508_p4, 1, 0 }
  0x15   : > { %s2269_s22 = scalar_select %p1513_p6, 1, 0 }
  0x16   : > { %s2271_s2 = sld [smem:[#allocation28_spill]]  ;;  %p1521_p8 = pnand %p1096_p5, %p142_p7 }
  0x17   : > { %2270 = sst [smem:[#allocation21_spill]] %s2269_s22  ;;  %s2273_s1 = sld [smem:[#allocation27_spill]] }
  0x18   : > { %s2272_s26 = scalar_select %p1521_p8, 1, 0 }
  0x19   : > { %p1220_p10 = pneg %p1521_p8  ;;  %s2275_s3 = sld [smem:[#allocation29_spill]] }
  0x1b   : > { %p1533_p11 = pnand %p1220_p10, %p2242_p1 }
  0x1c   : > { %s166_s25 = sshll.u32 %s2271_s2, 4  ;;  %s167_s25 = int_to_ptr.vmem [resolvable:$true] %s166_s25 }
  0x1d   : > { %s155_s29 = sshll.u32 %s2273_s1, 4  ;;  %s1289_s8 = scalar_lea.vmem %s167_s25, 128  ;;  %s156_s29 = int_to_ptr.vmem [resolvable:$true] %s155_s29 }
  0x1e   : > { %p1290_p12 = scmp.ne.s32.totalorder %s167_s25, %s1289_s8  ;;  %p1291_p13 = pneg %p1533_p11 }
  0x1f   : > { %s177_s7 = sshll.u32 %s2275_s3, 4  ;;  %p1297_p5 = scmp.lt.s32.totalorder %s167_s25, %s167_s25  ;;  %s1540_s7 = int_to_ptr.vmem [resolvable:$true] %s177_s7 }
  0x20   : > { %p1292_p0 = pnand %p1291_p13, %p1290_p12  ;;  %p1298_p7 = scmp.lt.s32.totalorder %s1289_s8, %s1289_s8 }
  0x22   : > { %p1293_p3 = pneg %p1292_p0  ;;  %p1299_p10 = por %p1298_p7, %p1297_p5 }
  0x24   : > { %p1300_p9 = pnand %p1299_p10, %p1293_p3 }
  0x26   : > { %1303 = shalt.err (!%p1300_p9)
}
  0x27   : > { %s1440_s9 = smov [#allocation8]   ;;  %s1304_s10 = scalar_lea.vmem %s156_s29, 64 }
  0x28   : > { %1226 = dma.vmem_to_smem (!%p1533_p11), %s167_s25, 128, %s1440_s9, [#allocation9]  }
  0x29   : > { %p1305_p1 = scmp.ne.s32.totalorder %s156_s29, %s1304_s10  ;;  %p1312_p4 = scmp.lt.s32.totalorder %s156_s29, %s156_s29 }
  0x2a   : > { %p1313_p8 = scmp.lt.s32.totalorder %s1304_s10, %s1304_s10 }
  0x2b   : > { %p1307_p2 = pnand %p1305_p1, %p1291_p13 }
  0x2c   : > { %p1314_p12 = por %p1313_p8, %p1312_p4 }
  0x2d   : > { %p1308_p6 = pneg %p1307_p2 }
  0x2f   : > { %p1315_p0 = pnand %p1314_p12, %p1308_p6 }
  0x31   : > { %1318 = shalt.err (!%p1315_p0)
}
  0x32   : > { %s1441_s11 = smov [#allocation7]   ;;  %s1319_s12 = scalar_lea.vmem %s1540_s7, 16 }
  0x33   : > { %1223 = dma.vmem_to_smem (!%p1533_p11), %s156_s29, 64, %s1441_s11, [#allocation6]  }
  0x34   : > { %p1320_p9 = scmp.ne.s32.totalorder %s1540_s7, %s1319_s12  ;;  %p1327_p2 = scmp.lt.s32.totalorder %s1540_s7, %s1540_s7 }
  0x35   : > { %p1328_p5 = scmp.lt.s32.totalorder %s1319_s12, %s1319_s12 }
  0x36   : > { %p1322_p3 = pnand %p1320_p9, %p1291_p13 }
  0x37   : > { %p1329_p4 = por %p1328_p5, %p1327_p2 }
  0x38   : > { %p1323_p1 = pneg %p1322_p3 }
  0x3a   : > { %p1330_p6 = pnand %p1329_p4, %p1323_p1 }
  0x3c   : > { %1333 = shalt.err (!%p1330_p6)
}
  0x3d   : > { %s1442_s13 = smov [#allocation10]   ;;  %s1565_s14 = sadd.s32 1, %s1438_s18  }
  0x3e   : > { %1229 = dma.vmem_to_smem (!%p1533_p11), %s1540_s7, 16, %s1442_s13, [#allocation9]  }
  0x3f   : > { %2276 = sst [smem:[#allocation22_spill]] %s1565_s14  ;;  %s26_s20 = ssub.s32 %s1438_s18, %s1565_s14 }
  0x40   : > { %s29_s23 = sadd.s32 1, %s1434_s17  ;;  %p27_p8 = scmp.eq.s32.totalorder %s26_s20, 0 }
  0x41   : > { %p36_p13 = scmp.ne.s32.totalorder %s1434_s17, %s1430_s16  ;;  %p37_p7 = scmp.eq.s32.totalorder %s1438_s18, 0 }
  0x42   : > { %p1241_p10 = scmp.lt.s32.totalorder %s1438_s18, 2  ;;  %p2278_p0 = scmp.eq.s32.totalorder %s1499_s19, 1 }
  0x43   : > { %s1575_s24 = scalar_select %p27_p8, %s1434_s17, %s29_s23  }
  0x44   : > { %p38_p12 = por %p37_p7, %p36_p13  ;;  %p1579_p9 = por %p2278_p0, %p36_p13 }
  0x45   : > { %2277 = sst [smem:[#allocation23_spill]] %s1575_s24  ;;  %s188_s27 = sand.u32 1, %s1434_s17  }
  0x46   : > { %s2279_s25 = scalar_select %p1579_p9, 1, 0 }
  0x47   : > { %s1202_s28 = sshll.u32 %s1438_s18, 10  ;;  %s1101_s29 = sshll.u32 %s188_s27, 6 }
  0x48   : > { %2280 = sst [smem:[#allocation24_spill]] %s2279_s25  ;;  %s2281_s0 = sld [smem:[#allocation26_spill]] }
  0x49   : > { %s192_s7 = scalar_lea.vmem [#allocation3], %s1101_s29  ;;  %p1590_p11 = pnand %p1241_p10, %p38_p12 }
  0x4a   : > { %s199_s8 = sshll.u32 %s192_s7, 4  ;;  %s1596_s10 = scalar_lea.sflag [#allocation4], %s188_s27  ;;  %s1594_s8 = int_to_ptr.vmem [resolvable:$true] %s199_s8 }
  0x4b   : > { %p1336_p1 = pneg %p1590_p11 }
  0x4e   : > { %s1588_s6 = scalar_lea.hbm %s2281_s0, %s1202_s28  ;;  %s1339_s20 = scalar_lea.hbm %s2281_s0, 2048 }
  0x4f   : > { %s1334_s11 = scalar_lea.hbm %s1588_s6, 1024  ;;  %p1340_p4 = scmp.lt.u32.totalorder %s1588_s6, %s2281_s0 }
  0x50   : > { %p1335_p3 = scmp.ne.s32.totalorder %s1588_s6, %s1334_s11  ;;  %p1341_p6 = scmp.lt.u32.totalorder %s1339_s20, %s1334_s11 }
  0x51   : > { %p1343_p13 = scmp.lt.u32.totalorder %s1334_s11, %s1588_s6 }
  0x52   : > { %p1337_p2 = pnand %p1336_p1, %p1335_p3  ;;  %p1342_p8 = por %p1341_p6, %p1340_p4 }
  0x54   : > { %p1338_p5 = pneg %p1337_p2  ;;  %p1344_p7 = por %p1343_p13, %p1342_p8 }
  0x56   : > { %p1345_p10 = pnand %p1344_p7, %p1338_p5 }
  0x58   : > { %1348 = shalt.err (!%p1345_p10)
}
  0x59   : > { %s1349_s27 = scalar_lea.vmem %s1594_s8, 1024  ;;  %s1443_s29 = smov [#allocation3]  }
  0x5a   : > { %p1350_p12 = scmp.ne.s32.totalorder %s1594_s8, %s1349_s27  ;;  %s1354_s30 = sshll.u32 %s1443_s29, 4  ;;  %s1355_s30 = int_to_ptr.vmem [resolvable:$false] %s1354_s30 }
  0x5b   : > { %s1356_s5 = scalar_lea.vmem %s1355_s30, 2048  ;;  %p1357_p2 = scmp.lt.s32.totalorder %s1594_s8, %s1355_s30 }
  0x5c   : > { %p1352_p0 = pnand %p1350_p12, %p1336_p1  ;;  %p1358_p4 = scmp.lt.s32.totalorder %s1356_s5, %s1349_s27 }
  0x5e   : > { %p1353_p3 = pneg %p1352_p0  ;;  %p1359_p6 = por %p1358_p4, %p1357_p2 }
  0x60   : > { %p1360_p8 = pnand %p1359_p6, %p1353_p3 }
  0x62   : > { %1363 = shalt.err (!%p1360_p8)
}
  0x63   : > { %s1444_s7 = smov 128   ;;  %s1445_s11 = smov 8  }
  0x64   : > { %1233 = dma.hbm_to_vmem [thread:$0]  (!%p1590_p11), %s1588_s6, 1024, %s1594_s8, %s1596_s10, %s1444_s7, %s1444_s7, %s1445_s11  }
  0x65   : > { %p2283_p1 = scmp.ne.s32.totalorder %s2272_s26, 0 }
  0x67   : > { %211 = sbr.rel (%p2283_p1) target bundleno = 497 (0x1f1), region = 36 }
  0x6e   : > { %s1627_s12 = sand.u32 1, %s1430_s16   ;;  %p2284_p5 = scmp.ne.s32.totalorder %s2268_s21, 0 }
  0x6f   : > { %s1105_s13 = sshll.u32 %s1627_s12, 6  ;;  %s214_s20 = scalar_lea.sflag [#allocation4], %s1627_s12 }
  0x70   : > { %s1631_s23 = scalar_lea.vmem [#allocation3], %s1105_s13 }
  0x71   : > { %1409 = dma.done.wait (%p2284_p5), %s214_s20, 1024  }
  0x72   : > { %1411 = vsyncadd (%p2284_p5), %s214_s20, 4294966272  ;;  %p2285_p11 = scmp.eq.s32.totalorder %s1499_s19, 0 }
  0x74   : > { %1413 = dma.done.wait (%p2285_p11), [#allocation6], 64   ;;  %p2286_p13 = pmov %p2285_p11 }
  0x75   : > { %p2287_p7 = pmov %p2285_p11 }
  0x76   : > { %1415 = vsyncadd (%p2286_p13), [#allocation6], 4294967232 }
  0x77   : > { %1417 = dma.done.wait (%p2287_p7), [#allocation9], 144   ;;  %p2288_p10 = pmov %p2287_p7 }
  0x79   : > { %1419 = vsyncadd (%p2288_p10), [#allocation9], 4294967152 }
  0x7a   : > { %234 = sfence }
  0x7b   : > { %v269_v0 = vld [vmem:[%s1631_s23] sm:$0xff]  ;;  %v271_v1 = vld [vmem:[%s1631_s23 + $0x10] sm:$0xff]  ;;  %vm255_vm0 = vcmask 146432   ;;  %s1446_s21 = smov 1   ;;  %vm258_vm1 = vcmask 140288   ;;  %v270_v2 = vld [vmem:[%s1631_s23 + $0x8] sm:$0xff] }
  0x7c   : > { %285 = vrot.lane.b32.xlu0 %v269_v0, %s1446_s21  ;;  %289 = vrot.lane.b32.xlu1 %v271_v1, %s1446_s21  ;;  %v272_v3 = vld [vmem:[%s1631_s23 + $0x18] sm:$0xff]  ;;  %v1447_v4 = vmov 0.0   ;;  %v273_v5 = vld [vmem:[%s1631_s23 + $0x20] sm:$0xff]  ;;  %vm309_vm2 = vcmask 138248   ;;  %s1110_s26 = sld [smem:[#allocation7 + $0x1]]  ;;  %s1655_s6 = sld [smem:[#allocation7 + $0x2]] }
  0x7d   : > { %256 = vst.msk [vmem:[#allocation2] sm:$0xff] %vm255_vm0, %v1447_v4  ;;  %257 = vst.msk [vmem:[#allocation2 + $0x8] sm:$0xff] %vm255_vm0, %v1447_v4  ;;  %v274_v6 = vld [vmem:[%s1631_s23 + $0x28] sm:$0xff]  ;;  %v275_v7 = vld [vmem:[%s1631_s23 + $0x30] sm:$0xff]  ;;  %s1659_s8 = sld [smem:[#allocation7 + $0x4]]  ;;  %s1663_s9 = sld [smem:[#allocation7 + $0x81]] }
  0x7e   : > { %260 = vst.msk [vmem:[#allocation2 + $0x18] sm:$0xff] %vm255_vm0, %v1447_v4  ;;  %261 = vst.msk [vmem:[#allocation2 + $0x20] sm:$0xff] %vm255_vm0, %v1447_v4  ;;  %v276_v8 = vld [vmem:[%s1631_s23 + $0x38] sm:$0xff]  ;;  %s1448_s10 = smov 127   ;;  %s1120_s28 = sld [smem:[#allocation7 + $0x82]]  ;;  %vm771_vm3 = vcmask 130048  }
  0x7f   : > { %263 = vst.msk [vmem:[#allocation2 + $0x30] sm:$0xff] %vm255_vm0, %v1447_v4  ;;  %264 = vst.msk [vmem:[#allocation2 + $0x38] sm:$0xff] %vm255_vm0, %v1447_v4  ;;  %s1449_s27 = smov 126   ;;  %s1128_s29 = sld [smem:[#allocation7 + $0x101]] }
  0x80   : > { %266 = vst.msk [vmem:[#allocation2 + $0x48] sm:$0xff] %vm255_vm0, %v1447_v4  ;;  %267 = vst.msk [vmem:[#allocation2 + $0x50] sm:$0xff] %vm255_vm0, %v1447_v4  ;;  %287 = vrot.lane.b32.xlu0 %v270_v2, %s1446_s21  ;;  %291 = vrot.lane.b32.xlu1 %v272_v3, %s1446_s21  ;;  %s1129_s30 = sld [smem:[#allocation7 + $0x102]]  ;;  %s1137_s5 = sld [smem:[#allocation7 + $0x181]] }
  0x81   : > { %259 = vst.msk [vmem:[#allocation2 + $0x10] sm:$0x3] %vm258_vm1, %v1447_v4  ;;  %262 = vst.msk [vmem:[#allocation2 + $0x28] sm:$0x3] %vm258_vm1, %v1447_v4  ;;  %s1122_s7 = sld [smem:[#allocation7 + $0x84]]  ;;  %s1138_s11 = sld [smem:[#allocation7 + $0x182]] }
  0x82   : > { %265 = vst.msk [vmem:[#allocation2 + $0x40] sm:$0x3] %vm258_vm1, %v1447_v4  ;;  %268 = vst.msk [vmem:[#allocation2 + $0x58] sm:$0x3] %vm258_vm1, %v1447_v4  ;;  %v325_v13 = vstv %s1110_s26  ;;  %v339_v18 = vstv %s1655_s6  ;;  %s1114_s13 = sld [smem:[#allocation7 + $0x5]]  ;;  %s1131_s23 = sld [smem:[#allocation7 + $0x104]] }
  0x83   : > { %v361_v25 = vstv %s1659_s8  ;;  %v432_v27 = vstv %s1663_s9  ;;  %s1123_s20 = sld [smem:[#allocation7 + $0x85]]  ;;  %s1140_s26 = sld [smem:[#allocation7 + $0x184]] }
  0x84   : > { %293 = vrot.lane.b32.xlu0 %v273_v5, %s1446_s21  ;;  %295 = vrot.lane.b32.xlu1 %v274_v6, %s1446_s21  ;;  %v446_v34 = vstv %s1120_s28  ;;  %s1116_s6 = sld [smem:[#allocation7 + $0x7]]  ;;  %s1141_s9 = sld [smem:[#allocation7 + $0x185]] }
  0x85   : > { %v539_v36 = vstv %s1128_s29  ;;  %s1125_s8 = sld [smem:[#allocation7 + $0x87]]  ;;  %s1117_s28 = sld [smem:[#allocation7 + $0x8]] }
  0x86   : > { %v553_v41 = vstv %s1129_s30  ;;  %v646_v46 = vstv %s1137_s5  ;;  %s1126_s29 = sld [smem:[#allocation7 + $0x88]]  ;;  %s1134_s30 = sld [smem:[#allocation7 + $0x107]] }
  0x87   : > { %v468_v51 = vstv %s1122_s7  ;;  %v660_v55 = vstv %s1138_s11  ;;  %s1135_s5 = sld [smem:[#allocation7 + $0x108]]  ;;  %s1143_s7 = sld [smem:[#allocation7 + $0x187]] }
  0x88   : > { %297 = vrot.lane.b32.xlu0 %v275_v7, %s1446_s21  ;;  %299 = vrot.lane.b32.xlu1 %v276_v8, %s1446_s21  ;;  %v375_v58 = vstv %s1114_s13  ;;  %s1132_s21 = sld [smem:[#allocation7 + $0x105]]  ;;  %v575_v1 = vstv %s1131_s23  ;;  %s1144_s11 = sld [smem:[#allocation7 + $0x188]] }
  0x89   : > { %v482_v61 = vstv %s1123_s20  ;;  %s320_s13 = sld [smem:[#allocation7]]  ;;  %s1112_s20 = sld [smem:[#allocation7 + $0x3]] }
  0x8a   : > { %s1118_s23 = sld [smem:[#allocation7 + $0x80]]  ;;  %s1896_s0 = sld [smem:[#allocation8 + $0x381]] }
  0x8b   : > { %s1898_s1 = sld [smem:[#allocation8 + $0x2]]  ;;  %s1918_s22 = sld [smem:[#allocation8 + $0x3]] }
  0x8c   : > { %s1900_s2 = sld [smem:[#allocation8 + $0x82]]  ;;  %s1926_s15 = sld [smem:[#allocation8 + $0x83]] }
  0x8d   : > { %s1902_s3 = sld [smem:[#allocation8 + $0x102]]  ;;  %s1928_s25 = sld [smem:[#allocation10 + $0x1]] }
  0x8e   : > { %v589_v5 = vstv %s1132_s21  ;;  %s1130_s21 = sld [smem:[#allocation7 + $0x103]]  ;;  %s1904_s24 = sld [smem:[#allocation8 + $0x182]] }
  0x8f   : > { %s1907_s17 = sld [smem:[#allocation8 + $0x202]]  ;;  %s1933_s4 = sld [smem:[#allocation8 + $0x103]] }
  0x90   : > { %s1909_s16 = sld [smem:[#allocation8 + $0x282]]  ;;  %s1998_s19 = sld [smem:[#allocation8 + $0x203]] }
  0x91   : > { %s1911_s14 = sld [smem:[#allocation8 + $0x302]] }
  0x92   : > { %s1913_s18 = sld [smem:[#allocation8 + $0x382]] }
  0x93   : > { %2289 = sst [smem:[#allocation25_spill]] %s1928_s25 }
  0xee   : > { %v286_v9 = vpop.permute.xlu0 %285  ;;  %v290_v10 = vpop.permute.xlu1 %289 }
  0xef   : > { %310 = vst.msk [vmem:[#allocation2 + $0x1] sm:$0xff] %vm309_vm2, %v286_v9  ;;  %312 = vst.msk [vmem:[#allocation2 + $0x19] sm:$0xff] %vm309_vm2, %v290_v10  ;;  %v682_v9 = vstv %s1140_s26  ;;  %s1136_s26 = sld [smem:[#allocation7 + $0x180]] }
  0xf2   : > { %v288_v11 = vpop.permute.xlu0 %287  ;;  %v292_v12 = vpop.permute.xlu1 %291 }
  0xf3   : > { %311 = vst.msk [vmem:[#allocation2 + $0x9] sm:$0xff] %vm309_vm2, %v288_v11  ;;  %313 = vst.msk [vmem:[#allocation2 + $0x21] sm:$0xff] %vm309_vm2, %v292_v12 }
  0xf6   : > { %v1661_v14 = vld [vmem:[#allocation2] sm:$0xff]  ;;  %v294_v15 = vpop.permute.xlu0 %293  ;;  %v296_v16 = vpop.permute.xlu1 %295  ;;  %v1681_v26 = vld [vmem:[#allocation2 + $0x18] sm:$0xff] }
  0xf7   : > { %v326_v17 = vmul.f32 %v325_v13, %v1661_v14  ;;  %314 = vst.msk [vmem:[#allocation2 + $0x31] sm:$0xff] %vm309_vm2, %v294_v15  ;;  %315 = vst.msk [vmem:[#allocation2 + $0x39] sm:$0xff] %vm309_vm2, %v296_v16  ;;  %v340_v23 = vmul.f32 %v339_v18, %v1661_v14  ;;  %v1676_v24 = vld [vmem:[#allocation2 + $0x1] sm:$0xff]  ;;  %v433_v31 = vmul.f32 %v432_v27, %v1681_v26  ;;  %v1718_v50 = vld [vmem:[#allocation2 + $0x19] sm:$0xff]  ;;  %v397_v15 = vstv %s1116_s6  ;;  %s1139_s6 = sld [smem:[#allocation7 + $0x183]] }
  0xf8   : > { %v362_v29 = vmul.f32 %v361_v25, %v1676_v24  ;;  %v447_v38 = vmul.f32 %v446_v34, %v1681_v26  ;;  %v469_v53 = vmul.f32 %v468_v51, %v1718_v50  ;;  %v376_v60 = vmul.f32 %v375_v58, %v1676_v24 }
  0xf9   : > { %330 = vrot.lane.b32.xlu0 %v326_v17, %s1448_s10  ;;  %v483_v63 = vmul.f32 %v482_v61, %v1718_v50 }
  0xfa   : > { %v1670_v19 = vld [vmem:[#allocation2 + $0x8] sm:$0xff]  ;;  %v298_v20 = vpop.permute.xlu0 %297  ;;  %v300_v21 = vpop.permute.xlu1 %299  ;;  %v1692_v33 = vld [vmem:[#allocation2 + $0x20] sm:$0xff] }
  0xfb   : > { %v327_v22 = vmul.f32 %v325_v13, %v1670_v19  ;;  %316 = vst.msk [vmem:[#allocation2 + $0x49] sm:$0xff] %vm309_vm2, %v298_v20  ;;  %317 = vst.msk [vmem:[#allocation2 + $0x51] sm:$0xff] %vm309_vm2, %v300_v21  ;;  %v341_v28 = vmul.f32 %v339_v18, %v1670_v19  ;;  %v1686_v30 = vld [vmem:[#allocation2 + $0x9] sm:$0xff]  ;;  %v434_v37 = vmul.f32 %v432_v27, %v1692_v33  ;;  %v1724_v54 = vld [vmem:[#allocation2 + $0x21] sm:$0xff]  ;;  %v504_v21 = vstv %s1125_s8  ;;  %s1828_s8 = sld [smem:[#allocation7 + $0x6]] }
  0xfc   : > { %v363_v32 = vmul.f32 %v361_v25, %v1686_v30  ;;  %v448_v42 = vmul.f32 %v446_v34, %v1692_v33  ;;  %v470_v56 = vmul.f32 %v468_v51, %v1724_v54  ;;  %v377_v62 = vmul.f32 %v375_v58, %v1686_v30  ;;  %v1758_v13 = vld [vmem:[#allocation2 + $0x2] sm:$0xff]  ;;  %v1764_v18 = vld [vmem:[#allocation2 + $0xa] sm:$0xff]  ;;  %v1766_v20 = vld [vmem:[#allocation2 + $0x1a] sm:$0xff] }
  0xfd   : > { %332 = vrot.lane.b32.xlu1 %v327_v22, %s1448_s10  ;;  %344 = vrot.lane.b32.xlu0 %v340_v23, %s1449_s27  ;;  %v484_v2 = vmul.f32 %v482_v61, %v1724_v54  ;;  %v398_v17 = vmul.f32 %v397_v15, %v1758_v13  ;;  %v399_v22 = vmul.f32 %v397_v15, %v1764_v18  ;;  %v1772_v25 = vld [vmem:[#allocation2 + $0x22] sm:$0xff]  ;;  %v696_v27 = vstv %s1141_s9  ;;  %s1831_s9 = sld [smem:[#allocation7 + $0x86]] }
  0xfe   : > { %v1696_v35 = vld [vmem:[#allocation2 + $0x30] sm:$0xff]  ;;  %v1703_v40 = vld [vmem:[#allocation2 + $0x38] sm:$0xff]  ;;  %v505_v23 = vmul.f32 %v504_v21, %v1766_v20  ;;  %v321_v61 = vstv %s320_s13  ;;  %s1871_s13 = sld [smem:[#allocation8 + $0x200]] }
  0xff   : > { %v540_v39 = vmul.f32 %v539_v36, %v1696_v35  ;;  %v541_v43 = vmul.f32 %v539_v36, %v1703_v40  ;;  %v554_v44 = vmul.f32 %v553_v41, %v1696_v35  ;;  %v555_v49 = vmul.f32 %v553_v41, %v1703_v40  ;;  %v1738_v0 = vld [vmem:[#allocation2 + $0x31] sm:$0xff]  ;;  %v1744_v4 = vld [vmem:[#allocation2 + $0x39] sm:$0xff] }
 0x100   : > { %v576_v3 = vmul.f32 %v575_v1, %v1738_v0  ;;  %v577_v6 = vmul.f32 %v575_v1, %v1744_v4  ;;  %v590_v7 = vmul.f32 %v589_v5, %v1738_v0  ;;  %v591_v10 = vmul.f32 %v589_v5, %v1744_v4 }
 0x101   : > { %346 = vrot.lane.b32.xlu1 %v341_v28, %s1449_s27  ;;  %366 = vrot.lane.b32.xlu0 %v362_v29, %s1448_s10  ;;  %v506_v28 = vmul.f32 %v504_v21, %v1772_v25  ;;  %v518_v36 = vstv %s1126_s29  ;;  %v611_v41 = vstv %s1134_s30  ;;  %s1859_s29 = sld [smem:[#allocation7 + $0x186]]  ;;  %s1861_s30 = sld [smem:[#allocation8]] }
 0x102   : > { %v1710_v45 = vld [vmem:[#allocation2 + $0x48] sm:$0xff]  ;;  %v1715_v48 = vld [vmem:[#allocation2 + $0x50] sm:$0xff] }
 0x103   : > { %v647_v47 = vmul.f32 %v646_v46, %v1710_v45  ;;  %v648_v52 = vmul.f32 %v646_v46, %v1715_v48  ;;  %v661_v57 = vmul.f32 %v660_v55, %v1710_v45  ;;  %v662_v59 = vmul.f32 %v660_v55, %v1715_v48  ;;  %v1750_v8 = vld [vmem:[#allocation2 + $0x49] sm:$0xff]  ;;  %v1756_v12 = vld [vmem:[#allocation2 + $0x51] sm:$0xff] }
 0x104   : > { %v683_v11 = vmul.f32 %v682_v9, %v1750_v8  ;;  %v684_v16 = vmul.f32 %v682_v9, %v1756_v12  ;;  %v697_v29 = vmul.f32 %v696_v27, %v1750_v8  ;;  %v625_v46 = vstv %s1135_s5  ;;  %v1798_v51 = vld [vmem:[#allocation2 + $0x4a] sm:$0xff]  ;;  %s1863_s5 = sld [smem:[#allocation8 + $0x80]] }
 0x105   : > { %368 = vrot.lane.b32.xlu1 %v363_v32, %s1448_s10  ;;  %437 = vrot.lane.b32.xlu0 %v433_v31, %s1448_s10  ;;  %v411_v31 = vstv %s1117_s28  ;;  %v698_v32 = vmul.f32 %v696_v27, %v1756_v12  ;;  %s1841_s28 = sld [smem:[#allocation7 + $0x106]] }
 0x106   : > { %v412_v34 = vmul.f32 %v411_v31, %v1758_v13 }
 0x109   : > { %439 = vrot.lane.b32.xlu1 %v434_v37, %s1448_s10  ;;  %451 = vrot.lane.b32.xlu0 %v447_v38, %s1449_s27  ;;  %v413_v37 = vmul.f32 %v411_v31, %v1764_v18  ;;  %v519_v38 = vmul.f32 %v518_v36, %v1766_v20 }
 0x10d   : > { %453 = vrot.lane.b32.xlu1 %v448_v42, %s1449_s27  ;;  %544 = vrot.lane.b32.xlu0 %v540_v39, %s1448_s10  ;;  %v1786_v39 = vld [vmem:[#allocation2 + $0x32] sm:$0xff]  ;;  %v520_v42 = vmul.f32 %v518_v36, %v1772_v25 }
 0x111   : > { %546 = vrot.lane.b32.xlu1 %v541_v43, %s1448_s10  ;;  %558 = vrot.lane.b32.xlu0 %v554_v44, %s1449_s27  ;;  %v612_v43 = vmul.f32 %v611_v41, %v1786_v39  ;;  %v1792_v44 = vld [vmem:[#allocation2 + $0x3a] sm:$0xff] }
 0x115   : > { %560 = vrot.lane.b32.xlu1 %v555_v49, %s1449_s27  ;;  %651 = vrot.lane.b32.xlu0 %v647_v47, %s1448_s10  ;;  %v613_v47 = vmul.f32 %v611_v41, %v1792_v44  ;;  %v626_v49 = vmul.f32 %v625_v46, %v1786_v39 }
 0x119   : > { %653 = vrot.lane.b32.xlu1 %v648_v52, %s1448_s10  ;;  %473 = vrot.lane.b32.xlu0 %v469_v53, %s1448_s10  ;;  %v718_v52 = vstv %s1143_s7  ;;  %v627_v53 = vmul.f32 %v625_v46, %v1792_v44  ;;  %s1867_s7 = sld [smem:[#allocation8 + $0x100]] }
 0x11a   : > { %v719_v55 = vmul.f32 %v718_v52, %v1798_v51 }
 0x11d   : > { %475 = vrot.lane.b32.xlu1 %v470_v56, %s1448_s10  ;;  %665 = vrot.lane.b32.xlu0 %v661_v57, %s1449_s27  ;;  %v1804_v56 = vld [vmem:[#allocation2 + $0x52] sm:$0xff]  ;;  %v732_v57 = vstv %s1144_s11  ;;  %s1869_s11 = sld [smem:[#allocation8 + $0x180]] }
 0x11e   : > { %v720_v58 = vmul.f32 %v718_v52, %v1804_v56  ;;  %v569_v52 = vstv %s1130_s21  ;;  %s1882_s21 = sld [smem:[#allocation8 + $0x81]] }
 0x121   : > { %667 = vrot.lane.b32.xlu1 %v662_v59, %s1449_s27  ;;  %380 = vrot.lane.b32.xlu0 %v376_v60, %s1449_s27  ;;  %v733_v59 = vmul.f32 %v732_v57, %v1798_v51  ;;  %v734_v60 = vmul.f32 %v732_v57, %v1804_v56 }
 0x125   : > { %382 = vrot.lane.b32.xlu1 %v377_v62, %s1449_s27  ;;  %487 = vrot.lane.b32.xlu0 %v483_v63, %s1449_s27  ;;  %v322_v62 = vmul.f32 %v321_v61, %v1661_v14 }
 0x129   : > { %489 = vrot.lane.b32.xlu1 %v484_v2, %s1449_s27  ;;  %580 = vrot.lane.b32.xlu0 %v576_v3, %s1448_s10  ;;  %v355_v2 = vstv %s1112_s20  ;;  %v323_v3 = vmul.f32 %v321_v61, %v1670_v19  ;;  %s1873_s20 = sld [smem:[#allocation8 + $0x280]] }
 0x12a   : > { %v357_v14 = vmul.f32 %v355_v2, %v1686_v30 }
 0x12d   : > { %582 = vrot.lane.b32.xlu1 %v577_v6, %s1448_s10  ;;  %594 = vrot.lane.b32.xlu0 %v590_v7, %s1449_s27 }
 0x131   : > { %596 = vrot.lane.b32.xlu1 %v591_v10, %s1449_s27  ;;  %687 = vrot.lane.b32.xlu0 %v683_v11, %s1448_s10  ;;  %v356_v10 = vmul.f32 %v355_v2, %v1676_v24 }
 0x135   : > { %689 = vrot.lane.b32.xlu1 %v684_v16, %s1448_s10  ;;  %402 = vrot.lane.b32.xlu0 %v398_v17, %s1448_s10 }
 0x139   : > { %404 = vrot.lane.b32.xlu1 %v399_v22, %s1448_s10  ;;  %509 = vrot.lane.b32.xlu0 %v505_v23, %s1448_s10  ;;  %v428_v22 = vstv %s1118_s23  ;;  %s1876_s23 = sld [smem:[#allocation8 + $0x300]] }
 0x13a   : > { %v430_v36 = vmul.f32 %v428_v22, %v1692_v33 }
 0x13d   : > { %511 = vrot.lane.b32.xlu1 %v506_v28, %s1448_s10  ;;  %701 = vrot.lane.b32.xlu0 %v697_v29, %s1449_s27  ;;  %v429_v29 = vmul.f32 %v428_v22, %v1681_v26 }
 0x141   : > { %703 = vrot.lane.b32.xlu1 %v698_v32, %s1449_s27  ;;  %416 = vrot.lane.b32.xlu0 %v412_v34, %s1449_s27 }
 0x145   : > { %418 = vrot.lane.b32.xlu1 %v413_v37, %s1449_s27  ;;  %523 = vrot.lane.b32.xlu0 %v519_v38, %s1449_s27 }
 0x149   : > { %525 = vrot.lane.b32.xlu1 %v520_v42, %s1449_s27  ;;  %616 = vrot.lane.b32.xlu0 %v612_v43, %s1448_s10 }
 0x14d   : > { %618 = vrot.lane.b32.xlu1 %v613_v47, %s1448_s10  ;;  %630 = vrot.lane.b32.xlu0 %v626_v49, %s1449_s27 }
 0x151   : > { %632 = vrot.lane.b32.xlu1 %v627_v53, %s1449_s27  ;;  %723 = vrot.lane.b32.xlu0 %v719_v55, %s1448_s10 }
 0x155   : > { %725 = vrot.lane.b32.xlu1 %v720_v58, %s1448_s10  ;;  %737 = vrot.lane.b32.xlu0 %v733_v59, %s1449_s27  ;;  %s1121_s10 = sld [smem:[#allocation7 + $0x83]] }
 0x159   : > { %739 = vrot.lane.b32.xlu1 %v734_v60, %s1449_s27  ;;  %s1127_s27 = sld [smem:[#allocation7 + $0x100]] }
 0x15b   : > { %v462_v31 = vstv %s1121_s10  ;;  %s1878_s10 = sld [smem:[#allocation8 + $0x380]] }
 0x15c   : > { %v463_v38 = vmul.f32 %v462_v31, %v1718_v50  ;;  %v464_v26 = vmul.f32 %v462_v31, %v1724_v54  ;;  %v570_v50 = vmul.f32 %v569_v52, %v1738_v0  ;;  %v642_v54 = vstv %s1136_s26  ;;  %s1886_s26 = sld [smem:[#allocation8 + $0x101]] }
 0x15f   : > { %v535_v30 = vstv %s1127_s27  ;;  %s1880_s27 = sld [smem:[#allocation8 + $0x1]] }
 0x160   : > { %v536_v49 = vmul.f32 %v535_v30, %v1696_v35  ;;  %v537_v33 = vmul.f32 %v535_v30, %v1703_v40  ;;  %v571_v35 = vmul.f32 %v569_v52, %v1744_v4  ;;  %v643_v40 = vmul.f32 %v642_v54, %v1710_v45 }
 0x16b   : > { %v331_v63 = vpop.permute.xlu0 %330 }
 0x16c   : > { %v336_v1 = vadd.f32 %v331_v63, %v322_v62 }
 0x16f   : > { %v333_v5 = vpop.permute.xlu1 %332  ;;  %v345_v6 = vpop.permute.xlu0 %344 }
 0x170   : > { %v337_v7 = vadd.f32 %v333_v5, %v323_v3  ;;  %v350_v9 = vadd.f32 %v345_v6, %v336_v1  ;;  %v676_v6 = vstv %s1139_s6  ;;  %s1888_s6 = sld [smem:[#allocation8 + $0x181]] }
 0x171   : > { %v677_v4 = vmul.f32 %v676_v6, %v1750_v8 }
 0x172   : > { %v358_v11 = vadd.f32 %v356_v10, %v350_v9  ;;  %v644_v10 = vmul.f32 %v642_v54, %v1715_v48  ;;  %v746_v54 = vstv %s1861_s30  ;;  %s1992_s30 = sld [smem:[#allocation10 + $0x2]] }
 0x173   : > { %v347_v15 = vpop.permute.xlu1 %346  ;;  %v367_v16 = vpop.permute.xlu0 %366 }
 0x174   : > { %v351_v17 = vadd.f32 %v347_v15, %v337_v7  ;;  %v372_v21 = vadd.f32 %v367_v16, %v358_v11  ;;  %v391_v15 = vstv %s1828_s8  ;;  %s1890_s8 = sld [smem:[#allocation8 + $0x201]] }
 0x176   : > { %v359_v23 = vadd.f32 %v357_v14, %v351_v17 }
 0x177   : > { %v369_v27 = vpop.permute.xlu1 %368  ;;  %v438_v28 = vpop.permute.xlu0 %437 }
 0x178   : > { %v1818_v19 = vadd.f32 %v369_v27, %v359_v23  ;;  %v443_v24 = vadd.f32 %v438_v28, %v429_v29  ;;  %v678_v27 = vmul.f32 %v676_v6, %v1756_v12  ;;  %v392_v28 = vmul.f32 %v391_v15, %v1758_v13 }
 0x179   : > { %v498_v29 = vstv %s1831_s9  ;;  %s1892_s9 = sld [smem:[#allocation8 + $0x281]]  ;;  %v920_v6 = vstv %s1876_s23  ;;  %s2060_s23 = sld [smem:[#allocation10 + $0x6]] }
 0x17a   : > { %v499_v12 = vmul.f32 %v498_v29, %v1766_v20 }
 0x17b   : > { %v440_v32 = vpop.permute.xlu1 %439  ;;  %v452_v34 = vpop.permute.xlu0 %451 }
 0x17c   : > { %v457_v37 = vadd.f32 %v452_v34, %v443_v24  ;;  %v444_v41 = vadd.f32 %v440_v32, %v430_v36 }
 0x17e   : > { %v465_v42 = vadd.f32 %v463_v38, %v457_v37 }
 0x17f   : > { %v454_v43 = vpop.permute.xlu1 %453  ;;  %v545_v46 = vpop.permute.xlu0 %544 }
 0x180   : > { %v458_v47 = vadd.f32 %v454_v43, %v444_v41  ;;  %v550_v53 = vadd.f32 %v545_v46, %v536_v49  ;;  %v500_v43 = vmul.f32 %v498_v29, %v1772_v25  ;;  %v605_v46 = vstv %s1841_s28  ;;  %s1894_s28 = sld [smem:[#allocation8 + $0x301]] }
 0x181   : > { %v756_v29 = vstv %s1898_s1  ;;  %s1109_s1 = sshll.u32 %s1627_s12, 7 }
 0x182   : > { %v466_v55 = vadd.f32 %v464_v26, %v458_v47 }
 0x183   : > { %v547_v57 = vpop.permute.xlu1 %546  ;;  %v559_v58 = vpop.permute.xlu0 %558 }
 0x184   : > { %v564_v59 = vadd.f32 %v559_v58, %v550_v53  ;;  %v551_v60 = vadd.f32 %v547_v57, %v537_v33 }
 0x186   : > { %v572_v61 = vadd.f32 %v570_v50, %v564_v59 }
 0x187   : > { %v561_v62 = vpop.permute.xlu1 %560  ;;  %v652_v63 = vpop.permute.xlu0 %651 }
 0x188   : > { %v565_v1 = vadd.f32 %v561_v62, %v551_v60  ;;  %v657_v0 = vadd.f32 %v652_v63, %v643_v40  ;;  %v712_v60 = vstv %s1859_s29  ;;  %s1920_s29 = sld [smem:[#allocation10]]  ;;  %v891_v40 = vstv %s1873_s20  ;;  %s2050_s20 = sld [smem:[#allocation8 + $0x383]] }
 0x189   : > { %v713_v62 = vmul.f32 %v712_v60, %v1798_v51  ;;  %v714_v63 = vmul.f32 %v712_v60, %v1804_v56  ;;  %v862_v56 = vstv %s1871_s13  ;;  %s2048_s13 = sld [smem:[#allocation8 + $0x303]] }
 0x18a   : > { %v573_v2 = vadd.f32 %v571_v35, %v565_v1 }
 0x18b   : > { %v654_v3 = vpop.permute.xlu1 %653  ;;  %v474_v5 = vpop.permute.xlu0 %473 }
 0x18c   : > { %v658_v16 = vadd.f32 %v654_v3, %v644_v10  ;;  %v479_v31 = vadd.f32 %v474_v5, %v465_v42  ;;  %v804_v3 = vstv %s1867_s7  ;;  %v833_v5 = vstv %s1869_s11  ;;  %s1996_s7 = sld [smem:[#allocation10 + $0x3]]  ;;  %s2038_s11 = sld [smem:[#allocation10 + $0x5]] }
 0x18d   : > { %v808_v10 = vstv %s1886_s26 }
 0x18f   : > { %v476_v7 = vpop.permute.xlu1 %475  ;;  %v666_v9 = vpop.permute.xlu0 %665 }
 0x190   : > { %v671_v11 = vadd.f32 %v666_v9, %v657_v0  ;;  %v480_v37 = vadd.f32 %v476_v7, %v466_v55  ;;  %v949_v0 = vstv %s1878_s10  ;;  %v750_v7 = vstv %s1880_s27  ;;  %s2062_s10 = sld [smem:[#allocation10 + $0x7]]  ;;  %s1450_s27 = smov [#allocation11]  }
 0x191   : > { %v779_v9 = vstv %s1882_s21  ;;  %s1368_s21 = sshll.u32 %s1450_s27, 4  ;;  %s1369_s21 = int_to_ptr.vmem [resolvable:$false] %s1368_s21 }
 0x192   : > { %v1836_v17 = vadd.f32 %v677_v4, %v671_v11  ;;  %v837_v4 = vstv %s1888_s6  ;;  %s1370_s26 = scalar_lea.vmem %s1369_s21, 4096 }
 0x193   : > { %v668_v14 = vpop.permute.xlu1 %667  ;;  %v381_v22 = vpop.permute.xlu0 %380 }
 0x194   : > { %v672_v23 = vadd.f32 %v668_v14, %v658_v16  ;;  %v386_v45 = vadd.f32 %v381_v22, %v372_v21  ;;  %v393_v21 = vmul.f32 %v391_v15, %v1764_v18  ;;  %v606_v18 = vmul.f32 %v605_v46, %v1786_v39 }
 0x195   : > { %v607_v39 = vmul.f32 %v605_v46, %v1792_v44  ;;  %v866_v15 = vstv %s1890_s8  ;;  %v791_v46 = vstv %s1926_s15 }
 0x196   : > { %v1843_v48 = vadd.f32 %v678_v27, %v672_v23  ;;  %v1845_v8 = vadd.f32 %v392_v28, %v386_v45  ;;  %v895_v23 = vstv %s1892_s9  ;;  %v924_v45 = vstv %s1894_s28 }
 0x197   : > { %v383_v24 = vpop.permute.xlu1 %382  ;;  %v488_v32 = vpop.permute.xlu0 %487  ;;  %v953_v27 = vstv %s1896_s0  ;;  %s2036_s0 = sld [smem:[#allocation8 + $0x283]] }
 0x198   : > { %v387_v34 = vadd.f32 %v383_v24, %v1818_v19  ;;  %v493_v36 = vadd.f32 %v488_v32, %v479_v31  ;;  %v785_v31 = vstv %s1900_s2  ;;  %v843_v32 = vstv %s1904_s24  ;;  %s978_s24 = scalar_lea.sflag [#allocation5], %s1627_s12 }
 0x19a   : > { %v1850_v13 = vadd.f32 %v393_v21, %v387_v34  ;;  %v1852_v38 = vadd.f32 %v499_v12, %v493_v36  ;;  %v872_v34 = vstv %s1907_s17  ;;  %v930_v12 = vstv %s1911_s14 }
 0x19b   : > { %v490_v30 = vpop.permute.xlu1 %489  ;;  %v581_v41 = vpop.permute.xlu0 %580 }
 0x19c   : > { %v494_v42 = vadd.f32 %v490_v30, %v480_v37  ;;  %v586_v47 = vadd.f32 %v581_v41, %v572_v61  ;;  %v959_v37 = vstv %s1913_s18 }
 0x19e   : > { %v1856_v49 = vadd.f32 %v500_v43, %v494_v42  ;;  %v762_v42 = vstv %s1918_s22  ;;  %v768_v43 = vstv %s1920_s29 }
 0x19f   : > { %v583_v19 = vpop.permute.xlu1 %582  ;;  %v595_v26 = vpop.permute.xlu0 %594 }
 0x1a0   : > { %v600_v52 = vadd.f32 %v595_v26, %v586_v47  ;;  %v587_v20 = vadd.f32 %v583_v19, %v573_v2  ;;  %v775_v2 = vstv %s1863_s5  ;;  %v797_v47 = vstv %s1928_s25  ;;  %s1994_s5 = sld [smem:[#allocation8 + $0x183]]  ;;  %s2000_s25 = sld [smem:[#allocation10 + $0x4]] }
 0x1a2   : > { %v1865_v53 = vadd.f32 %v606_v18, %v600_v52 }
 0x1a3   : > { %v597_v55 = vpop.permute.xlu1 %596  ;;  %v688_v25 = vpop.permute.xlu0 %687 }
 0x1a4   : > { %v601_v57 = vadd.f32 %v597_v55, %v587_v20  ;;  %v693_v61 = vadd.f32 %v688_v25, %v1836_v17 }
 0x1a6   : > { %v1884_v58 = vadd.f32 %v607_v39, %v601_v57 }
 0x1a7   : > { %v690_v33 = vpop.permute.xlu1 %689  ;;  %v403_v59 = vpop.permute.xlu0 %402 }
 0x1a8   : > { %v694_v11 = vadd.f32 %v690_v33, %v1843_v48  ;;  %v408_v17 = vadd.f32 %v403_v59, %v1845_v8  ;;  %v814_v48 = vstv %s1902_s3  ;;  %v901_v8 = vstv %s1909_s16  ;;  %s2122_s3 = scalar_lea.vmem [#allocation11], %s1109_s1  ;;  %s2291_s16 = sld [smem:[#allocation20_spill]] }
 0x1a9   : > { %s991_s18 = sshll.u32 %s2122_s3, 4  ;;  %s2169_s18 = int_to_ptr.vmem [resolvable:$true] %s991_s18 }
 0x1aa   : > { %p1371_p2 = scmp.lt.s32.totalorder %s2169_s18, %s1369_s21 }
 0x1ab   : > { %v405_v44 = vpop.permute.xlu1 %404  ;;  %v510_v50 = vpop.permute.xlu0 %509 }
 0x1ac   : > { %v409_v36 = vadd.f32 %v405_v44, %v1850_v13  ;;  %v515_v21 = vadd.f32 %v510_v50, %v1852_v38  ;;  %v820_v13 = vstv %s1933_s4 }
 0x1ae   : > { %s1203_s17 = sshll.u32 %s2291_s16, 11 }
 0x1af   : > { %v512_v1 = vpop.permute.xlu1 %511  ;;  %v702_v35 = vpop.permute.xlu0 %701 }
 0x1b0   : > { %v707_v51 = vadd.f32 %v702_v35, %v693_v61  ;;  %v516_v38 = vadd.f32 %v512_v1, %v1856_v49 }
 0x1b2   : > { %v1942_v16 = vadd.f32 %v713_v62, %v707_v51 }
 0x1b3   : > { %v704_v14 = vpop.permute.xlu1 %703  ;;  %v417_v22 = vpop.permute.xlu0 %416 }
 0x1b4   : > { %v708_v28 = vadd.f32 %v704_v14, %v694_v11  ;;  %v422_v24 = vadd.f32 %v417_v22, %v408_v17 }
 0x1b6   : > { %v1962_v52 = vadd.f32 %v714_v63, %v708_v28  ;;  %v747_v18 = vmul.f32 %v746_v54, %v422_v24  ;;  %v776_v20 = vmul.f32 %v775_v2, %v422_v24  ;;  %v805_v55 = vmul.f32 %v804_v3, %v422_v24 }
 0x1b7   : > { %v419_v30 = vpop.permute.xlu1 %418  ;;  %v524_v41 = vpop.permute.xlu0 %523  ;;  %v834_v25 = vmul.f32 %v833_v5, %v422_v24  ;;  %v863_v57 = vmul.f32 %v862_v56, %v422_v24  ;;  %v892_v39 = vmul.f32 %v891_v40, %v422_v24  ;;  %v921_v33 = vmul.f32 %v920_v6, %v422_v24 }
 0x1b8   : > { %v423_v19 = vadd.f32 %v419_v30, %v409_v36  ;;  %v529_v26 = vadd.f32 %v524_v41, %v515_v21  ;;  %v950_v59 = vmul.f32 %v949_v0, %v422_v24 }
 0x1ba   : > { %v748_v49 = vmul.f32 %v746_v54, %v423_v19  ;;  %v777_v44 = vmul.f32 %v775_v2, %v423_v19  ;;  %v806_v50 = vmul.f32 %v804_v3, %v423_v19  ;;  %v751_v62 = vmul.f32 %v750_v7, %v529_v26 }
 0x1bb   : > { %v526_v60 = vpop.permute.xlu1 %525  ;;  %v617_v61 = vpop.permute.xlu0 %616  ;;  %v780_v63 = vmul.f32 %v779_v9, %v529_v26  ;;  %v809_v1 = vmul.f32 %v808_v10, %v529_v26  ;;  %v838_v35 = vmul.f32 %v837_v4, %v529_v26  ;;  %v867_v51 = vmul.f32 %v866_v15, %v529_v26 }
 0x1bc   : > { %v896_v11 = vmul.f32 %v895_v23, %v529_v26  ;;  %v925_v17 = vmul.f32 %v924_v45, %v529_v26  ;;  %v954_v54 = vmul.f32 %v953_v27, %v529_v26  ;;  %v753_v2 = vadd.f32 %v751_v62, %v747_v18 }
 0x1bd   : > { %v782_v3 = vadd.f32 %v780_v63, %v776_v20  ;;  %v811_v14 = vadd.f32 %v809_v1, %v805_v55  ;;  %v840_v22 = vadd.f32 %v838_v35, %v834_v25  ;;  %v869_v28 = vadd.f32 %v867_v51, %v863_v57 }
 0x1be   : > { %v898_v24 = vadd.f32 %v896_v11, %v892_v39  ;;  %v927_v36 = vadd.f32 %v925_v17, %v921_v33  ;;  %v956_v21 = vadd.f32 %v954_v54, %v950_v59  ;;  %v835_v26 = vmul.f32 %v833_v5, %v423_v19 }
 0x1bf   : > { %v619_v30 = vpop.permute.xlu1 %618  ;;  %v631_v41 = vpop.permute.xlu0 %630  ;;  %v864_v18 = vmul.f32 %v862_v56, %v423_v19  ;;  %v893_v20 = vmul.f32 %v891_v40, %v423_v19  ;;  %v530_v55 = vadd.f32 %v526_v60, %v516_v38  ;;  %v922_v25 = vmul.f32 %v920_v6, %v423_v19 }
 0x1c0   : > { %v951_v57 = vmul.f32 %v949_v0, %v423_v19  ;;  %v622_v39 = vadd.f32 %v617_v61, %v1865_v53  ;;  %v623_v33 = vadd.f32 %v619_v30, %v1884_v58  ;;  %v878_v61 = vstv %s1998_s19  ;;  %s2292_s19 = sld [smem:[#allocation30_spill]] }
 0x1c1   : > { %v752_v59 = vmul.f32 %v750_v7, %v530_v55  ;;  %v781_v62 = vmul.f32 %v779_v9, %v530_v55  ;;  %v810_v63 = vmul.f32 %v808_v10, %v530_v55  ;;  %v839_v5 = vmul.f32 %v837_v4, %v530_v55 }
 0x1c2   : > { %v868_v56 = vmul.f32 %v866_v15, %v530_v55  ;;  %v897_v40 = vmul.f32 %v895_v23, %v530_v55  ;;  %v926_v6 = vmul.f32 %v924_v45, %v530_v55  ;;  %v955_v53 = vmul.f32 %v953_v27, %v530_v55 }
 0x1c3   : > { %v754_v58 = vadd.f32 %v752_v59, %v748_v49  ;;  %v783_v0 = vadd.f32 %v781_v62, %v777_v44  ;;  %v812_v7 = vadd.f32 %v810_v63, %v806_v50  ;;  %v841_v9 = vadd.f32 %v839_v5, %v835_v26  ;;  %v633_v10 = vpop.permute.xlu1 %632  ;;  %v724_v4 = vpop.permute.xlu0 %723 }
 0x1c4   : > { %v870_v19 = vadd.f32 %v868_v56, %v864_v18  ;;  %v899_v15 = vadd.f32 %v897_v40, %v893_v20  ;;  %v928_v23 = vadd.f32 %v926_v6, %v922_v25  ;;  %v957_v38 = vadd.f32 %v955_v53, %v951_v57 }
 0x1c5   : > { %v636_v60 = vadd.f32 %v631_v41, %v622_v39  ;;  %v826_v45 = vstv %s1992_s30  ;;  %v849_v27 = vstv %s1994_s5  ;;  %v855_v49 = vstv %s1996_s7 }
 0x1c6   : > { %v637_v44 = vadd.f32 %v633_v10, %v623_v33  ;;  %v729_v50 = vadd.f32 %v724_v4, %v1942_v16  ;;  %v884_v1 = vstv %s2000_s25  ;;  %v913_v53 = vstv %s2038_s11  ;;  %s2167_s22 = scalar_lea.hbm %s2292_s19, %s1203_s17  ;;  %s1364_s25 = scalar_lea.vmem %s2169_s18, 2048 }
 0x1c7   : > { %v757_v35 = vmul.f32 %v756_v29, %v636_v60  ;;  %v786_v51 = vmul.f32 %v785_v31, %v636_v60  ;;  %v815_v11 = vmul.f32 %v814_v48, %v636_v60  ;;  %v844_v17 = vmul.f32 %v843_v32, %v636_v60  ;;  %p1365_p12 = scmp.ne.s32.totalorder %s2169_s18, %s1364_s25  ;;  %p1372_p4 = scmp.lt.s32.totalorder %s1370_s26, %s1364_s25 }
 0x1c8   : > { %v873_v16 = vmul.f32 %v872_v34, %v636_v60  ;;  %v902_v54 = vmul.f32 %v901_v8, %v636_v60  ;;  %v931_v30 = vmul.f32 %v930_v12, %v636_v60  ;;  %v960_v41 = vmul.f32 %v959_v37, %v636_v60 }
 0x1c9   : > { %v759_v26 = vadd.f32 %v757_v35, %v753_v2  ;;  %v788_v18 = vadd.f32 %v786_v51, %v782_v3  ;;  %v817_v20 = vadd.f32 %v815_v11, %v811_v14  ;;  %v846_v55 = vadd.f32 %v844_v17, %v840_v22  ;;  %p1366_p0 = pnand %p1365_p12, %p1579_p9  ;;  %p1373_p6 = por %p1372_p4, %p1371_p2 }
 0x1ca   : > { %v875_v25 = vadd.f32 %v873_v16, %v869_v28  ;;  %v904_v57 = vadd.f32 %v902_v54, %v898_v24  ;;  %v933_v39 = vadd.f32 %v931_v30, %v927_v36  ;;  %v962_v33 = vadd.f32 %v960_v41, %v956_v21 }
 0x1cb   : > { %v758_v59 = vmul.f32 %v756_v29, %v637_v44  ;;  %v787_v62 = vmul.f32 %v785_v31, %v637_v44  ;;  %v816_v63 = vmul.f32 %v814_v48, %v637_v44  ;;  %v845_v5 = vmul.f32 %v843_v32, %v637_v44  ;;  %v738_v29 = vpop.permute.xlu0 %737  ;;  %p1367_p3 = pneg %p1366_p0 }
 0x1cc   : > { %v874_v56 = vmul.f32 %v872_v34, %v637_v44  ;;  %v903_v2 = vmul.f32 %v901_v8, %v637_v44  ;;  %v932_v3 = vmul.f32 %v930_v12, %v637_v44  ;;  %v961_v14 = vmul.f32 %v959_v37, %v637_v44  ;;  %v726_v8 = vpop.permute.xlu1 %725 }
 0x1cd   : > { %v2080_v31 = vadd.f32 %v758_v59, %v754_v58  ;;  %v2082_v48 = vadd.f32 %v787_v62, %v783_v0  ;;  %v2084_v32 = vadd.f32 %v816_v63, %v812_v7  ;;  %v2086_v34 = vadd.f32 %v845_v5, %v841_v9  ;;  %p1374_p8 = pnand %p1373_p6, %p1367_p3 }
 0x1ce   : > { %v876_v12 = vadd.f32 %v874_v56, %v870_v19  ;;  %v905_v37 = vadd.f32 %v903_v2, %v899_v15  ;;  %v934_v22 = vadd.f32 %v932_v3, %v928_v23  ;;  %v963_v28 = vadd.f32 %v961_v14, %v957_v38 }
 0x1cf   : > { %v907_v24 = vstv %s2036_s0  ;;  %v936_v36 = vstv %s2048_s13  ;;  %v965_v21 = vstv %s2050_s20  ;;  %v743_v40 = vadd.f32 %v738_v29, %v729_v50 }
 0x1d0   : > { %v730_v6 = vadd.f32 %v726_v8, %v1962_v52  ;;  %v942_v58 = vstv %s2060_s23  ;;  %v971_v0 = vstv %s2062_s10  ;;  %v740_v16 = vpop.permute.xlu1 %739 }
 0x1d1   : > { %v763_v7 = vmul.f32 %v762_v42, %v743_v40  ;;  %v792_v9 = vmul.f32 %v791_v46, %v743_v40  ;;  %v821_v10 = vmul.f32 %v820_v13, %v743_v40  ;;  %v850_v4 = vmul.f32 %v849_v27, %v743_v40 }
 0x1d2   : > { %v879_v19 = vmul.f32 %v878_v61, %v743_v40  ;;  %v908_v15 = vmul.f32 %v907_v24, %v743_v40  ;;  %v937_v52 = vmul.f32 %v936_v36, %v743_v40  ;;  %v966_v23 = vmul.f32 %v965_v21, %v743_v40 }
 0x1d3   : > { %v765_v38 = vadd.f32 %v763_v7, %v759_v26  ;;  %v794_v60 = vadd.f32 %v792_v9, %v788_v18  ;;  %v823_v44 = vadd.f32 %v821_v10, %v817_v20  ;;  %v852_v50 = vadd.f32 %v850_v4, %v846_v55 }
 0x1d4   : > { %v881_v35 = vadd.f32 %v879_v19, %v875_v25  ;;  %v910_v51 = vadd.f32 %v908_v15, %v904_v57  ;;  %v939_v11 = vadd.f32 %v937_v52, %v933_v39  ;;  %v968_v17 = vadd.f32 %v966_v23, %v962_v33 }
 0x1d5   : > { %v769_v54 = vadd.f32 %v768_v43, %v765_v38  ;;  %v798_v30 = vadd.f32 %v797_v47, %v794_v60  ;;  %v827_v41 = vadd.f32 %v826_v45, %v823_v44  ;;  %v856_v59 = vadd.f32 %v855_v49, %v852_v50 }
 0x1d6   : > { %v885_v26 = vadd.f32 %v884_v1, %v881_v35  ;;  %v914_v18 = vadd.f32 %v913_v53, %v910_v51  ;;  %v943_v20 = vadd.f32 %v942_v58, %v939_v11  ;;  %v972_v55 = vadd.f32 %v971_v0, %v968_v17 }
 0x1d7   : > { %772 = vst.msk [vmem:[%s2122_s3] sm:$0xff] %vm771_vm3, %v769_v54  ;;  %1153 = vst.msk [vmem:[%s2122_s3 + $0x10] sm:$0xff] %vm771_vm3, %v798_v30  ;;  %v744_v25 = vadd.f32 %v740_v16, %v730_v6 }
 0x1d8   : > { %1160 = vst.msk [vmem:[%s2122_s3 + $0x20] sm:$0xff] %vm771_vm3, %v827_v41  ;;  %1167 = vst.msk [vmem:[%s2122_s3 + $0x30] sm:$0xff] %vm771_vm3, %v856_v59 }
 0x1d9   : > { %1174 = vst.msk [vmem:[%s2122_s3 + $0x40] sm:$0xff] %vm771_vm3, %v885_v26  ;;  %1181 = vst.msk [vmem:[%s2122_s3 + $0x50] sm:$0xff] %vm771_vm3, %v914_v18  ;;  %v764_v57 = vmul.f32 %v762_v42, %v744_v25  ;;  %v793_v39 = vmul.f32 %v791_v46, %v744_v25  ;;  %v822_v33 = vmul.f32 %v820_v13, %v744_v25 }
 0x1da   : > { %1188 = vst.msk [vmem:[%s2122_s3 + $0x60] sm:$0xff] %vm771_vm3, %v943_v20  ;;  %1195 = vst.msk [vmem:[%s2122_s3 + $0x70] sm:$0xff] %vm771_vm3, %v972_v55  ;;  %v851_v62 = vmul.f32 %v849_v27, %v744_v25  ;;  %v880_v63 = vmul.f32 %v878_v61, %v744_v25  ;;  %v909_v5 = vmul.f32 %v907_v24, %v744_v25 }
 0x1db   : > { %v938_v56 = vmul.f32 %v936_v36, %v744_v25  ;;  %v967_v2 = vmul.f32 %v965_v21, %v744_v25  ;;  %v766_v42 = vadd.f32 %v764_v57, %v2080_v31  ;;  %v795_v46 = vadd.f32 %v793_v39, %v2082_v48 }
 0x1dc   : > { %v824_v13 = vadd.f32 %v822_v33, %v2084_v32  ;;  %v853_v27 = vadd.f32 %v851_v62, %v2086_v34  ;;  %v882_v61 = vadd.f32 %v880_v63, %v876_v12  ;;  %v911_v3 = vadd.f32 %v909_v5, %v905_v37 }
 0x1dd   : > { %v940_v14 = vadd.f32 %v938_v56, %v934_v22  ;;  %v969_v29 = vadd.f32 %v967_v2, %v963_v28  ;;  %v770_v31 = vadd.f32 %v768_v43, %v766_v42  ;;  %v799_v48 = vadd.f32 %v797_v47, %v795_v46 }
 0x1de   : > { %v828_v32 = vadd.f32 %v826_v45, %v824_v13  ;;  %v857_v34 = vadd.f32 %v855_v49, %v853_v27  ;;  %v886_v43 = vadd.f32 %v884_v1, %v882_v61  ;;  %v915_v47 = vadd.f32 %v913_v53, %v911_v3 }
 0x1df   : > { %v944_v8 = vadd.f32 %v942_v58, %v940_v14  ;;  %v973_v45 = vadd.f32 %v971_v0, %v969_v29  ;;  %773 = vst.msk [vmem:[%s2122_s3 + $0x8] sm:$0xff] %vm771_vm3, %v770_v31  ;;  %1154 = vst.msk [vmem:[%s2122_s3 + $0x18] sm:$0xff] %vm771_vm3, %v799_v48 }
 0x1e0   : > { %1161 = vst.msk [vmem:[%s2122_s3 + $0x28] sm:$0xff] %vm771_vm3, %v828_v32  ;;  %1168 = vst.msk [vmem:[%s2122_s3 + $0x38] sm:$0xff] %vm771_vm3, %v857_v34 }
 0x1e1   : > { %1175 = vst.msk [vmem:[%s2122_s3 + $0x48] sm:$0xff] %vm771_vm3, %v886_v43  ;;  %1182 = vst.msk [vmem:[%s2122_s3 + $0x58] sm:$0xff] %vm771_vm3, %v915_v47 }
 0x1e2   : > { %1189 = vst.msk [vmem:[%s2122_s3 + $0x68] sm:$0xff] %vm771_vm3, %v944_v8  ;;  %1196 = vst.msk [vmem:[%s2122_s3 + $0x78] sm:$0xff] %vm771_vm3, %v973_v45 }
 0x1e3   : > { %1377 = shalt.err (!%p1374_p8)
}
 0x1e4   : > { %s1378_s6 = scalar_lea.hbm %s2167_s22, 2048  ;;  %s1382_s28 = scalar_lea.hbm %s2292_s19, 4096 }
 0x1e5   : > { %p1379_p1 = scmp.ne.s32.totalorder %s2167_s22, %s1378_s6  ;;  %p1383_p13 = scmp.lt.u32.totalorder %s2167_s22, %s2292_s19 }
 0x1e6   : > { %p1384_p7 = scmp.lt.u32.totalorder %s1382_s28, %s1378_s6  ;;  %p1386_p12 = scmp.lt.u32.totalorder %s1378_s6, %s2167_s22 }
 0x1e7   : > { %p1380_p5 = pnand %p1379_p1, %p1579_p9 }
 0x1e8   : > { %p1385_p10 = por %p1384_p7, %p1383_p13 }
 0x1e9   : > { %p1381_p11 = pneg %p1380_p5 }
 0x1ea   : > { %p1387_p0 = por %p1386_p12, %p1385_p10 }
 0x1ec   : > { %p1388_p3 = pnand %p1387_p0, %p1381_p11 }
 0x1ee   : > { %1391 = shalt.err (!%p1388_p3)
}
 0x1ef   : > { %s1451_s5 = smov 128   ;;  %s1452_s7 = smov 8  }
 0x1f0   : > { %1218 = dma.vmem_to_hbm [thread:$0]  (%p1579_p9), %s2169_s18, 2048, %s2167_s22, %s978_s24, %s1451_s5, %s1451_s5, %s1452_s7  }
 0x1f1 PF: > { %s2294_s0 = sld [smem:[#allocation16_spill]]  ;;  %s2295_s11 = sld [smem:[#allocation21_spill]] }
 0x1f2   : > { %s2296_s13 = sld [smem:[#allocation19_spill]] }
 0x1f7   : > { %s1006_s20 = sand.u32 1, %s2294_s0   ;;  %p2297_p2 = scmp.ne.s32.totalorder %s2295_s11, 0 }
 0x1f8   : > { %p2298_p4 = scmp.ge.s32.totalorder %s2296_s13, 2  ;;  %s1007_s23 = scalar_lea.sflag [#allocation5], %s1006_s20 }
 0x1fa   : > { %p1235_p6 = pnand %p2298_p4, %p2297_p2 }
 0x1fc   : > { %1421 = dma.done.wait (!%p1235_p6), %s1007_s23, 2048  }
 0x1fd   : > { %1423 = vsyncadd (!%p1235_p6), %s1007_s23, 4294965248  ;;  %s2299_s18 = sld [smem:[#allocation22_spill]]  ;;  %s2300_s15 = sld [smem:[#allocation17_spill]] }
 0x1fe   : > { %s2301_s16 = sld [smem:[#allocation18_spill]]  ;;  %s2302_s17 = sld [smem:[#allocation23_spill]] }
 0x203   : > { %p19_p8 = scmp.ge.s32.totalorder %s2299_s18, 4  }
 0x205   :  { %21 = sbr.rel (!%p19_p8) target bundleno = 13 (0xd), region = 104 }
 0x20c   :  { %1012 = vsyncpa [#allocation4], 1 }
 0x20d   :  { %1014 = vsyncpa [#allocation4 + $0x1], 1 }
 0x20e   :  { %1015 = vsyncpa [#allocation5], 1 }
 0x20f   :  { %1017 = vsyncpa [#allocation5 + $0x1], 1 }
 0x210   :  { %1018 = vsyncpa [#allocation6], 1 }
 0x211   :  { %1020 = vsyncpa [#allocation6 + $0x1], 1 }
 0x212   :  { %1021 = vsyncpa [#allocation9], 1 }

</bundles_post_ra>
